<compile_context>
chip_gen: v7x
topology: tpu7x:2x2x1
jax: 0.10.0
libtpu: 0.0.40
codegen_flags: <defaults>
</compile_context>

<pallas_src>
import functools

import numpy as np
import jax
import jax.numpy as jnp
from jax import lax
from jax.experimental import pallas as pl
from jax.experimental.pallas import tpu as pltpu


# ----------------------------------------------------------------------------
# Fused DecVCBlock kernel
# ----------------------------------------------------------------------------
def _build_fused_kernel(*, T, TT, K, up, Kp, C_pad, C_real, H, hw, hw4):
    n1 = TT + 2 * (2 * hw + hw4)      # rows of h1   (slab frame offset hw)
    n2 = TT + 2 * (hw + hw4)          # rows of hid  (slab frame offset 2*hw)
    n3 = TT + 2 * hw4                 # rows of h3   (slab frame offset 3*hw)
    inv_c = 1.0 / float(C_real)
    pad_corr = float(C_pad - C_real) / float(C_real)
    eps = 1e-5

    def kernel(xs_ref, w_ref, w4_ref, b_ref, gb_ref, o_ref):
        t0 = pl.program_id(1) * TT            # global tile start (pre-upsample)
        x = xs_ref[0, 0]                      # (Ls, C_pad) bf16 slab (with halo)
        gb = gb_ref[0]                        # (8, C_pad) f32: g1,b1,...,g4,b4

        def cln_relu(acc, layer):
            # Conditional LayerNorm (stats over the C_real true channels; padded
            # lanes of acc are exactly zero -> centered sum needs only a mu^2
            # correction term) followed by ReLU.
            acc = acc + b_ref[layer]
            mu = jnp.sum(acc, axis=-1, keepdims=True) * inv_c
            c = acc - mu
            var = jnp.sum(c * c, axis=-1, keepdims=True) * inv_c - pad_corr * (mu * mu)
            h = c * lax.rsqrt(jnp.maximum(var, 0.0) + eps)
            h = h * gb[2 * layer:2 * layer + 1, :] + gb[2 * layer + 1:2 * layer + 2, :]
            # TODO(synk): dropout / spectral_norm are training-time only; omitted.
            return jnp.maximum(h, 0.0)

        def conv(xin_b, n_out, layer):
            # 1-D same-conv as K accumulating bf16 MXU matmuls (no im2col patch).
            acc = jnp.dot(xin_b[0:n_out, :], w_ref[layer, 0],
                          preferred_element_type=jnp.float32)
            for k in range(1, K):
                acc = acc + jnp.dot(xin_b[k:k + n_out, :], w_ref[layer, k],
                                    preferred_element_type=jnp.float32)
            return acc

        def zero_outside(a, n_rows, frame):
            # Re-apply each layer's zero "same"-padding at the true sequence
            # boundary; interior tile halos keep their real values.
            g = (t0 - H + frame) + lax.broadcasted_iota(jnp.int32, (n_rows, 1), 0)
            return jnp.where((g >= 0) & (g < T), a, 0.0)

        # conv1 -> conv2 -> residual -> conv3 -> polyphase(conv4 o upsample) -> residual
        h1 = zero_outside(cln_relu(conv(x, n1, 0), 0), n1, hw)
        h2 = cln_relu(conv(h1.astype(jnp.bfloat16), n2, 1), 1)
        hid = zero_outside(x[2 * hw:2 * hw + n2, :].astype(jnp.float32) + h2,
                           n2, 2 * hw)
        h3 = zero_outside(cln_relu(conv(hid.astype(jnp.bfloat16), n3, 2), 2),
                          n3, 3 * hw)

        h3_b = h3.astype(jnp.bfloat16)
        hid_tile = hid[hw + hw4:hw + hw4 + TT, :]          # rows [t0, t0+TT)

        # Polyphase conv4: out[(t0+q)*up + r] = sum_dd W4eff[r,dd] @ h3[q+dd] + hid[q]
        phases = []
        for r in range(up):
            acc = jnp.dot(h3_b[0:TT, :], w4_ref[r, 0],
                          preferred_element_type=jnp.float32)
            for dd in range(1, Kp):
                acc = acc + jnp.dot(h3_b[dd:dd + TT, :], w4_ref[r, dd],
                                    preferred_element_type=jnp.float32)
            phases.append(cln_relu(acc, 3) + hid_tile)

        # Phase r lives in lanes [r*C_pad, (r+1)*C_pad); the (B, Tpad, up*C_pad)
        # output reshapes (for free, row-major) to (B, Tpad*up, C_pad) outside.
        o_ref[0] = jnp.concatenate(phases, axis=-1).astype(o_ref.dtype)

    return kernel


def dec_vc_block_forward(x, cond, params, up_scale, *, tile_t=256,
                         padded_output=False, out_dtype=None):
    """Fused DecVCBlock forward. x: (B, T, C), cond: (B, D_style)."""
    B, T, C = x.shape
    K = params["conv1"]["w"].shape[0]
    # TODO(synk): even kernel sizes would need PyTorch's asymmetric padding split.
    assert K % 2 == 1, "only odd kernel sizes are supported"
    up = int(up_scale)
    hw = (K - 1) // 2
    hw4 = -(-hw // up)                        # ceil(hw/up): conv4 halo (pre-up rows)
    Kp = 2 * hw4 + 1                          # polyphase taps per phase
    H = 3 * hw + hw4                          # total per-side halo of the fused block
    C_pad = max(128, ((C + 127) // 128) * 128)
    cpad = C_pad - C
    out_dtype = x.dtype if out_dtype is None else out_dtype

    # Time tiling: TT divides Tpad; short sequences use a single exact tile,
    # long ones are padded up to a tile multiple (tail cropped afterwards).
    tile_t = max(8, (tile_t // 8) * 8)        # keep the out block 8-row aligned
    TT = T if T <= tile_t else tile_t
    Tpad = -(-T // TT) * TT
    NT = Tpad // TT
    Ls = TT + 2 * H                           # slab rows per tile (with halo)

    layers = [params["conv1"], params["conv2"], params["conv3"], params["conv4"]]

    def pad_w(w):                             # (K, C, C) -> (K, C_pad, C_pad)
        return jnp.pad(w, ((0, 0), (0, cpad), (0, cpad)))

    # conv1..3 weights: (3, K, C_pad, C_pad) bf16, one (C_pad, C_pad) tap each.
    w123 = jnp.stack([pad_w(p["w"]) for p in layers[:3]]).astype(jnp.bfloat16)

    # conv4 polyphase weights: W4eff[r, dd] = sum_k{ floor((r-hw+k)/up)+hw4 == dd } W4[k]
    w4p = pad_w(layers[3]["w"])
    w4eff = jnp.zeros((up, Kp, C_pad, C_pad), w4p.dtype)
    for r in range(up):
        for k in range(K):
            dd = (r - hw + k) // up + hw4
            w4eff = w4eff.at[r, dd].add(w4p[k])
    w4eff = w4eff.astype(jnp.bfloat16)

    b_stack = jnp.stack([jnp.pad(p["b"], ((0, 0), (0, cpad)))
                         for p in layers]).astype(jnp.float32)      # (4, 1, C_pad)

    # Conditional-LayerNorm gamma/beta precomputed once per call (XLA matmuls).
    gb_rows = []
    for p in layers:
        gb_rows.append(jnp.dot(cond, p["wg"]) + p["bg"])            # gamma_l : (B, C)
        gb_rows.append(jnp.dot(cond, p["wb"]) + p["bb"])            # beta_l  : (B, C)
    gb = jnp.pad(jnp.stack(gb_rows, axis=1), ((0, 0), (0, 0), (0, cpad)))
    gb = gb.astype(jnp.float32)                                     # (B, 8, C_pad)

    # Halo'd bf16 slabs so the whole pipeline (incl. across batch rows) is plain
    # BlockSpec double buffering; costs ~2H/TT extra input bytes.
    x_pad = jnp.pad(x.astype(jnp.bfloat16),
                    ((0, 0), (H, H + (Tpad - T)), (0, cpad)))
    slabs = jnp.stack([x_pad[:, i * TT:i * TT + Ls, :] for i in range(NT)], axis=1)

    kernel = _build_fused_kernel(T=T, TT=TT, K=K, up=up, Kp=Kp, C_pad=C_pad,
                                 C_real=C, H=H, hw=hw, hw4=hw4)

    # VMEM budget derived from the actual block footprints (+ margin for the
    # compiler-managed f32 intermediates), instead of a blanket 64 MiB.
    itemsize_out = np.dtype(out_dtype).itemsize
    vmem_est = (2 * Ls * C_pad * 2                               # bf16 x slab x2 bufs
                + 2 * (3 * K + up * Kp) * C_pad * C_pad * 2      # bf16 weights x2 bufs
                + 2 * 12 * C_pad * 4                             # biases + gamma/beta
                + 2 * TT * up * C_pad * itemsize_out             # output block x2 bufs
                + 8 * Ls * C_pad * 4)                            # live f32 intermediates
    vmem_limit = int(min(128 * 1024 * 1024, max(32 * 1024 * 1024, 2 * vmem_est)))

    out = pl.pallas_call(
        kernel,
        out_shape=jax.ShapeDtypeStruct((B, Tpad, up * C_pad), out_dtype),
        grid=(B, NT),
        in_specs=[
            pl.BlockSpec((1, 1, Ls, C_pad), lambda b, t: (b, t, 0, 0)),        # x slabs
            pl.BlockSpec((3, K, C_pad, C_pad), lambda b, t: (0, 0, 0, 0)),     # conv1..3 w
            pl.BlockSpec((up, Kp, C_pad, C_pad), lambda b, t: (0, 0, 0, 0)),   # conv4 poly w
            pl.BlockSpec((4, 1, C_pad), lambda b, t: (0, 0, 0)),               # biases
            pl.BlockSpec((1, 8, C_pad), lambda b, t: (b, 0, 0)),               # gamma/beta
        ],
        out_specs=pl.BlockSpec((1, TT, up * C_pad), lambda b, t: (b, t, 0)),
        compiler_params=pltpu.CompilerParams(
            dimension_semantics=("parallel", "parallel"),
            vmem_limit_bytes=vmem_limit,
        ),
    )(slabs, w123, w4eff, b_stack, gb)

    # Phase de-interleave is a free row-major reshape (no data movement).
    out = out.reshape(B, Tpad * up, C_pad)
    if Tpad != T:
        out = out[:, :T * up, :]
    if not padded_output and cpad:
        # In a stacked decoder pass padded_output=True to keep the lane-padded
        # layout flowing into the next block and skip this crop.
        out = out[:, :, :C]
    return out


# ----------------------------------------------------------------------------
# Deterministic parameter construction (weights in (K, C_in, C_out) layout)
# ----------------------------------------------------------------------------
def init_conv_params(key, d_hid, d_style, kernel_size):
    k1, k2, k3 = jax.random.split(key, 3)
    scale = 1.0 / jnp.sqrt(d_hid * kernel_size)
    return {
        "w": jax.random.normal(k1, (kernel_size, d_hid, d_hid), jnp.float32) * scale,
        "b": jnp.zeros((1, d_hid), jnp.float32),
        "wg": jax.random.normal(k2, (d_style, d_hid), jnp.float32) * 0.02,
        "bg": jnp.ones((1, d_hid), jnp.float32),
        "wb": jax.random.normal(k3, (d_style, d_hid), jnp.float32) * 0.02,
        "bb": jnp.zeros((1, d_hid), jnp.float32),
    }


def init_dec_vc_block_params(key, d_hid, d_style, kernel_size):
    keys = jax.random.split(key, 4)
    return {
        "conv1": init_conv_params(keys[0], d_hid, d_style, kernel_size),
        "conv2": init_conv_params(keys[1], d_hid, d_style, kernel_size),
        "conv3": init_conv_params(keys[2], d_hid, d_style, kernel_size),
        "conv4": init_conv_params(keys[3], d_hid, d_style, kernel_size),
    }


if __name__ == "__main__":
    # small config: d_hid=32, d_style=16 (dim_latent), kernel_size=3, up_scale=2
    B, T, D_HID, D_STYLE, K, UP = 2, 8, 32, 16, 3, 2

    key = jax.random.PRNGKey(0)
    kx, kc, kp = jax.random.split(key, 3)
    x = jax.random.normal(kx, (B, T, D_HID), jnp.float32)
    cond = jax.random.normal(kc, (B, D_STYLE), jnp.float32)
    params = init_dec_vc_block_params(kp, D_HID, D_STYLE, K)

    fwd = jax.jit(functools.partial(dec_vc_block_forward, up_scale=UP))
    out = fwd(x, cond, params)
    jax.block_until_ready(out)

    assert out.shape == (B, T * UP, D_HID), out.shape
    assert bool(jnp.all(jnp.isfinite(out)))
    print("KERNEL_OK")
</pallas_src>

<mosaic_0001>
module attributes {stable_mosaic.version = 11 : i64} {
  func.func @kernel(%arg0: i32, %arg1: i32, %arg2: memref<1x1x16x128xbf16, #tpu.memory_space<vmem>>, %arg3: memref<3x3x128x128xbf16, #tpu.memory_space<vmem>>, %arg4: memref<2x3x128x128xbf16, #tpu.memory_space<vmem>>, %arg5: memref<4x1x128xf32, #tpu.memory_space<vmem>>, %arg6: memref<1x8x128xf32, #tpu.memory_space<vmem>>, %arg7: memref<1x8x256xf32, #tpu.memory_space<vmem>>) attributes {dimension_semantics = [#tpu.dimension_semantics<parallel>, #tpu.dimension_semantics<parallel>], iteration_bounds = array<i64: 2, 1>, scalar_prefetch = 0 : i64, scratch_operands = 0 : i64, tpu.core_type = #tpu.core_type<tc>, window_params = [{transform_indices = @transform_0, window_bounds = array<i64: 1, 1, 16, 128>}, {pipeline_mode = #tpu.pipeline_mode<synchronous>, transform_indices = @transform_1, window_bounds = array<i64: 3, 3, 128, 128>}, {pipeline_mode = #tpu.pipeline_mode<synchronous>, transform_indices = @transform_2, window_bounds = array<i64: 2, 3, 128, 128>}, {pipeline_mode = #tpu.pipeline_mode<synchronous>, transform_indices = @transform_3, window_bounds = array<i64: 4, 1, 128>}, {transform_indices = @transform_4, window_bounds = array<i64: 1, 8, 128>}, {transform_indices = @transform_5, window_bounds = array<i64: 1, 8, 256>}]} {
    %c8_i32 = arith.constant 8 : i32
    %0 = arith.muli %arg1, %c8_i32 : i32
    %c0 = arith.constant 0 : index
    %c0_0 = arith.constant 0 : index
    %c0_1 = arith.constant 0 : index
    %c0_2 = arith.constant 0 : index
    %1 = vector.load %arg2[%c0, %c0_0, %c0_1, %c0_2] : memref<1x1x16x128xbf16, #tpu.memory_space<vmem>>, vector<1x1x16x128xbf16>
    %2 = vector.shape_cast %1 : vector<1x1x16x128xbf16> to vector<16x128xbf16>
    %c0_3 = arith.constant 0 : index
    %c0_4 = arith.constant 0 : index
    %c0_5 = arith.constant 0 : index
    %3 = vector.load %arg6[%c0_3, %c0_4, %c0_5] : memref<1x8x128xf32, #tpu.memory_space<vmem>>, vector<1x8x128xf32>
    %4 = vector.shape_cast %3 : vector<1x8x128xf32> to vector<8x128xf32>
    %5 = vector.extract_strided_slice %2 {offsets = [0, 0], sizes = [14, 128], strides = [1, 1]} : vector<16x128xbf16> to vector<14x128xbf16>
    %c0_6 = arith.constant 0 : index
    %c0_7 = arith.constant 0 : index
    %c0_8 = arith.constant 0 : index
    %c0_9 = arith.constant 0 : index
    %6 = vector.load %arg3[%c0_6, %c0_7, %c0_8, %c0_9] : memref<3x3x128x128xbf16, #tpu.memory_space<vmem>>, vector<1x1x128x128xbf16>
    %7 = vector.shape_cast %6 : vector<1x1x128x128xbf16> to vector<128x128xbf16>
    %cst = arith.constant dense<0.000000e+00> : vector<14x128xf32>
    %8 = tpu.matmul %5, %7, %cst {dimension_numbers = #tpu.dot_dimension_numbers<[1], [0], [0], [1], [0, 0, 1, 1], [], []>} : vector<14x128xbf16>, vector<128x128xbf16>, vector<14x128xf32> -> vector<14x128xf32>
    %9 = vector.extract_strided_slice %2 {offsets = [1, 0], sizes = [14, 128], strides = [1, 1]} : vector<16x128xbf16> to vector<14x128xbf16>
    %c0_10 = arith.constant 0 : index
    %c1 = arith.constant 1 : index
    %c0_11 = arith.constant 0 : index
    %c0_12 = arith.constant 0 : index
    %10 = vector.load %arg3[%c0_10, %c1, %c0_11, %c0_12] : memref<3x3x128x128xbf16, #tpu.memory_space<vmem>>, vector<1x1x128x128xbf16>
    %11 = vector.shape_cast %10 : vector<1x1x128x128xbf16> to vector<128x128xbf16>
    %cst_13 = arith.constant dense<0.000000e+00> : vector<14x128xf32>
    %12 = tpu.matmul %9, %11, %cst_13 {dimension_numbers = #tpu.dot_dimension_numbers<[1], [0], [0], [1], [0, 0, 1, 1], [], []>} : vector<14x128xbf16>, vector<128x128xbf16>, vector<14x128xf32> -> vector<14x128xf32>
    %13 = arith.addf %8, %12 : vector<14x128xf32>
    %14 = vector.extract_strided_slice %2 {offsets = [2, 0], sizes = [14, 128], strides = [1, 1]} : vector<16x128xbf16> to vector<14x128xbf16>
    %c0_14 = arith.constant 0 : index
    %c2 = arith.constant 2 : index
    %c0_15 = arith.constant 0 : index
    %c0_16 = arith.constant 0 : index
    %15 = vector.load %arg3[%c0_14, %c2, %c0_15, %c0_16] : memref<3x3x128x128xbf16, #tpu.memory_space<vmem>>, vector<1x1x128x128xbf16>
    %16 = vector.shape_cast %15 : vector<1x1x128x128xbf16> to vector<128x128xbf16>
    %cst_17 = arith.constant dense<0.000000e+00> : vector<14x128xf32>
    %17 = tpu.matmul %14, %16, %cst_17 {dimension_numbers = #tpu.dot_dimension_numbers<[1], [0], [0], [1], [0, 0, 1, 1], [], []>} : vector<14x128xbf16>, vector<128x128xbf16>, vector<14x128xf32> -> vector<14x128xf32>
    %18 = arith.addf %13, %17 : vector<14x128xf32>
    %c0_18 = arith.constant 0 : index
    %c0_19 = arith.constant 0 : index
    %c0_20 = arith.constant 0 : index
    %19 = vector.load %arg5[%c0_18, %c0_19, %c0_20] : memref<4x1x128xf32, #tpu.memory_space<vmem>>, vector<1x1x128xf32>
    %20 = vector.shape_cast %19 : vector<1x1x128xf32> to vector<1x128xf32>
    %21 = vector.broadcast %20 : vector<1x128xf32> to vector<14x128xf32>
    %22 = arith.addf %18, %21 : vector<14x128xf32>
    %cst_21 = arith.constant dense<0.000000e+00> : vector<14xf32>
    %23 = vector.multi_reduction <add>, %22, %cst_21 [1] : vector<14x128xf32> to vector<14xf32>
    %24 = vector.shape_cast %23 : vector<14xf32> to vector<14x1xf32>
    %cst_22 = arith.constant 3.125000e-02 : f32
    %25 = vector.broadcast %cst_22 : f32 to vector<14x1xf32>
    %26 = arith.mulf %24, %25 : vector<14x1xf32>
    %27 = vector.broadcast %26 : vector<14x1xf32> to vector<14x128xf32>
    %28 = arith.subf %22, %27 : vector<14x128xf32>
    %29 = arith.mulf %28, %28 : vector<14x128xf32>
    %cst_23 = arith.constant dense<0.000000e+00> : vector<14xf32>
    %30 = vector.multi_reduction <add>, %29, %cst_23 [1] : vector<14x128xf32> to vector<14xf32>
    %31 = vector.shape_cast %30 : vector<14xf32> to vector<14x1xf32>
    %cst_24 = arith.constant 3.125000e-02 : f32
    %32 = vector.broadcast %cst_24 : f32 to vector<14x1xf32>
    %33 = arith.mulf %31, %32 : vector<14x1xf32>
    %34 = arith.mulf %26, %26 : vector<14x1xf32>
    %cst_25 = arith.constant 3.000000e+00 : f32
    %35 = vector.broadcast %cst_25 : f32 to vector<14x1xf32>
    %36 = arith.mulf %35, %34 : vector<14x1xf32>
    %37 = arith.subf %33, %36 : vector<14x1xf32>
    %cst_26 = arith.constant 0.000000e+00 : f32
    %38 = vector.broadcast %cst_26 : f32 to vector<14x1xf32>
    %39 = arith.maximumf %37, %38 : vector<14x1xf32>
    %cst_27 = arith.constant 9.99999974E-6 : f32
    %40 = vector.broadcast %cst_27 : f32 to vector<14x1xf32>
    %41 = arith.addf %39, %40 : vector<14x1xf32>
    %42 = math.rsqrt %41 : vector<14x1xf32>
    %43 = vector.broadcast %42 : vector<14x1xf32> to vector<14x128xf32>
    %44 = arith.mulf %28, %43 : vector<14x128xf32>
    %45 = vector.extract_strided_slice %4 {offsets = [0, 0], sizes = [1, 128], strides = [1, 1]} : vector<8x128xf32> to vector<1x128xf32>
    %46 = vector.broadcast %45 : vector<1x128xf32> to vector<14x128xf32>
    %47 = arith.mulf %44, %46 : vector<14x128xf32>
    %48 = vector.extract_strided_slice %4 {offsets = [1, 0], sizes = [1, 128], strides = [1, 1]} : vector<8x128xf32> to vector<1x128xf32>
    %49 = vector.broadcast %48 : vector<1x128xf32> to vector<14x128xf32>
    %50 = arith.addf %47, %49 : vector<14x128xf32>
    %cst_28 = arith.constant 0.000000e+00 : f32
    %51 = vector.broadcast %cst_28 : f32 to vector<14x128xf32>
    %52 = arith.maximumf %50, %51 : vector<14x128xf32>
    %c4_i32 = arith.constant 4 : i32
    %53 = arith.subi %0, %c4_i32 : i32
    %c1_i32 = arith.constant 1 : i32
    %54 = arith.addi %53, %c1_i32 : i32
    %55 = tpu.iota {dimensions = array<i32: 0>} : vector<14x1xi32>
    %56 = vector.broadcast %54 : i32 to vector<14x1xi32>
    %57 = arith.addi %56, %55 : vector<14x1xi32>
    %c0_i32 = arith.constant 0 : i32
    %58 = vector.broadcast %c0_i32 : i32 to vector<14x1xi32>
    %59 = arith.cmpi sge, %57, %58 : vector<14x1xi32>
    %c8_i32_29 = arith.constant 8 : i32
    %60 = vector.broadcast %c8_i32_29 : i32 to vector<14x1xi32>
    %61 = arith.cmpi slt, %57, %60 : vector<14x1xi32>
    %62 = arith.andi %59, %61 : vector<14x1xi1>
    %cst_30 = arith.constant 0.000000e+00 : f32
    %63 = vector.shape_cast %62 : vector<14x1xi1> to vector<14x1xi1>
    %64 = vector.broadcast %63 : vector<14x1xi1> to vector<14x128xi1>
    %65 = vector.broadcast %cst_30 : f32 to vector<14x128xf32>
    %66 = arith.select %64, %52, %65 : vector<14x128xi1>, vector<14x128xf32>
    %67 = arith.truncf %66 : vector<14x128xf32> to vector<14x128xbf16>
    %68 = vector.extract_strided_slice %67 {offsets = [0, 0], sizes = [12, 128], strides = [1, 1]} : vector<14x128xbf16> to vector<12x128xbf16>
    %c1_31 = arith.constant 1 : index
    %c0_32 = arith.constant 0 : index
    %c0_33 = arith.constant 0 : index
    %c0_34 = arith.constant 0 : index
    %69 = vector.load %arg3[%c1_31, %c0_32, %c0_33, %c0_34] : memref<3x3x128x128xbf16, #tpu.memory_space<vmem>>, vector<1x1x128x128xbf16>
    %70 = vector.shape_cast %69 : vector<1x1x128x128xbf16> to vector<128x128xbf16>
    %cst_35 = arith.constant dense<0.000000e+00> : vector<12x128xf32>
    %71 = tpu.matmul %68, %70, %cst_35 {dimension_numbers = #tpu.dot_dimension_numbers<[1], [0], [0], [1], [0, 0, 1, 1], [], []>} : vector<12x128xbf16>, vector<128x128xbf16>, vector<12x128xf32> -> vector<12x128xf32>
    %72 = vector.extract_strided_slice %67 {offsets = [1, 0], sizes = [12, 128], strides = [1, 1]} : vector<14x128xbf16> to vector<12x128xbf16>
    %c1_36 = arith.constant 1 : index
    %c1_37 = arith.constant 1 : index
    %c0_38 = arith.constant 0 : index
    %c0_39 = arith.constant 0 : index
    %73 = vector.load %arg3[%c1_36, %c1_37, %c0_38, %c0_39] : memref<3x3x128x128xbf16, #tpu.memory_space<vmem>>, vector<1x1x128x128xbf16>
    %74 = vector.shape_cast %73 : vector<1x1x128x128xbf16> to vector<128x128xbf16>
    %cst_40 = arith.constant dense<0.000000e+00> : vector<12x128xf32>
    %75 = tpu.matmul %72, %74, %cst_40 {dimension_numbers = #tpu.dot_dimension_numbers<[1], [0], [0], [1], [0, 0, 1, 1], [], []>} : vector<12x128xbf16>, vector<128x128xbf16>, vector<12x128xf32> -> vector<12x128xf32>
    %76 = arith.addf %71, %75 : vector<12x128xf32>
    %77 = vector.extract_strided_slice %67 {offsets = [2, 0], sizes = [12, 128], strides = [1, 1]} : vector<14x128xbf16> to vector<12x128xbf16>
    %c1_41 = arith.constant 1 : index
    %c2_42 = arith.constant 2 : index
    %c0_43 = arith.constant 0 : index
    %c0_44 = arith.constant 0 : index
    %78 = vector.load %arg3[%c1_41, %c2_42, %c0_43, %c0_44] : memref<3x3x128x128xbf16, #tpu.memory_space<vmem>>, vector<1x1x128x128xbf16>
    %79 = vector.shape_cast %78 : vector<1x1x128x128xbf16> to vector<128x128xbf16>
    %cst_45 = arith.constant dense<0.000000e+00> : vector<12x128xf32>
    %80 = tpu.matmul %77, %79, %cst_45 {dimension_numbers = #tpu.dot_dimension_numbers<[1], [0], [0], [1], [0, 0, 1, 1], [], []>} : vector<12x128xbf16>, vector<128x128xbf16>, vector<12x128xf32> -> vector<12x128xf32>
    %81 = arith.addf %76, %80 : vector<12x128xf32>
    %c1_46 = arith.constant 1 : index
    %c0_47 = arith.constant 0 : index
    %c0_48 = arith.constant 0 : index
    %82 = vector.load %arg5[%c1_46, %c0_47, %c0_48] : memref<4x1x128xf32, #tpu.memory_space<vmem>>, vector<1x1x128xf32>
    %83 = vector.shape_cast %82 : vector<1x1x128xf32> to vector<1x128xf32>
    %84 = vector.broadcast %83 : vector<1x128xf32> to vector<12x128xf32>
    %85 = arith.addf %81, %84 : vector<12x128xf32>
    %cst_49 = arith.constant dense<0.000000e+00> : vector<12xf32>
    %86 = vector.multi_reduction <add>, %85, %cst_49 [1] : vector<12x128xf32> to vector<12xf32>
    %87 = vector.shape_cast %86 : vector<12xf32> to vector<12x1xf32>
    %cst_50 = arith.constant 3.125000e-02 : f32
    %88 = vector.broadcast %cst_50 : f32 to vector<12x1xf32>
    %89 = arith.mulf %87, %88 : vector<12x1xf32>
    %90 = vector.broadcast %89 : vector<12x1xf32> to vector<12x128xf32>
    %91 = arith.subf %85, %90 : vector<12x128xf32>
    %92 = arith.mulf %91, %91 : vector<12x128xf32>
    %cst_51 = arith.constant dense<0.000000e+00> : vector<12xf32>
    %93 = vector.multi_reduction <add>, %92, %cst_51 [1] : vector<12x128xf32> to vector<12xf32>
    %94 = vector.shape_cast %93 : vector<12xf32> to vector<12x1xf32>
    %cst_52 = arith.constant 3.125000e-02 : f32
    %95 = vector.broadcast %cst_52 : f32 to vector<12x1xf32>
    %96 = arith.mulf %94, %95 : vector<12x1xf32>
    %97 = arith.mulf %89, %89 : vector<12x1xf32>
    %cst_53 = arith.constant 3.000000e+00 : f32
    %98 = vector.broadcast %cst_53 : f32 to vector<12x1xf32>
    %99 = arith.mulf %98, %97 : vector<12x1xf32>
    %100 = arith.subf %96, %99 : vector<12x1xf32>
    %cst_54 = arith.constant 0.000000e+00 : f32
    %101 = vector.broadcast %cst_54 : f32 to vector<12x1xf32>
    %102 = arith.maximumf %100, %101 : vector<12x1xf32>
    %cst_55 = arith.constant 9.99999974E-6 : f32
    %103 = vector.broadcast %cst_55 : f32 to vector<12x1xf32>
    %104 = arith.addf %102, %103 : vector<12x1xf32>
    %105 = math.rsqrt %104 : vector<12x1xf32>
    %106 = vector.broadcast %105 : vector<12x1xf32> to vector<12x128xf32>
    %107 = arith.mulf %91, %106 : vector<12x128xf32>
    %108 = vector.extract_strided_slice %4 {offsets = [2, 0], sizes = [1, 128], strides = [1, 1]} : vector<8x128xf32> to vector<1x128xf32>
    %109 = vector.broadcast %108 : vector<1x128xf32> to vector<12x128xf32>
    %110 = arith.mulf %107, %109 : vector<12x128xf32>
    %111 = vector.extract_strided_slice %4 {offsets = [3, 0], sizes = [1, 128], strides = [1, 1]} : vector<8x128xf32> to vector<1x128xf32>
    %112 = vector.broadcast %111 : vector<1x128xf32> to vector<12x128xf32>
    %113 = arith.addf %110, %112 : vector<12x128xf32>
    %cst_56 = arith.constant 0.000000e+00 : f32
    %114 = vector.broadcast %cst_56 : f32 to vector<12x128xf32>
    %115 = arith.maximumf %113, %114 : vector<12x128xf32>
    %116 = vector.extract_strided_slice %2 {offsets = [2, 0], sizes = [12, 128], strides = [1, 1]} : vector<16x128xbf16> to vector<12x128xbf16>
    %117 = arith.extf %116 : vector<12x128xbf16> to vector<12x128xf32>
    %118 = arith.addf %117, %115 : vector<12x128xf32>
    %c4_i32_57 = arith.constant 4 : i32
    %119 = arith.subi %0, %c4_i32_57 : i32
    %c2_i32 = arith.constant 2 : i32
    %120 = arith.addi %119, %c2_i32 : i32
    %121 = tpu.iota {dimensions = array<i32: 0>} : vector<12x1xi32>
    %122 = vector.broadcast %120 : i32 to vector<12x1xi32>
    %123 = arith.addi %122, %121 : vector<12x1xi32>
    %c0_i32_58 = arith.constant 0 : i32
    %124 = vector.broadcast %c0_i32_58 : i32 to vector<12x1xi32>
    %125 = arith.cmpi sge, %123, %124 : vector<12x1xi32>
    %c8_i32_59 = arith.constant 8 : i32
    %126 = vector.broadcast %c8_i32_59 : i32 to vector<12x1xi32>
    %127 = arith.cmpi slt, %123, %126 : vector<12x1xi32>
    %128 = arith.andi %125, %127 : vector<12x1xi1>
    %cst_60 = arith.constant 0.000000e+00 : f32
    %129 = vector.shape_cast %128 : vector<12x1xi1> to vector<12x1xi1>
    %130 = vector.broadcast %129 : vector<12x1xi1> to vector<12x128xi1>
    %131 = vector.broadcast %cst_60 : f32 to vector<12x128xf32>
    %132 = arith.select %130, %118, %131 : vector<12x128xi1>, vector<12x128xf32>
    %133 = arith.truncf %132 : vector<12x128xf32> to vector<12x128xbf16>
    %134 = vector.extract_strided_slice %133 {offsets = [0, 0], sizes = [10, 128], strides = [1, 1]} : vector<12x128xbf16> to vector<10x128xbf16>
    %c2_61 = arith.constant 2 : index
    %c0_62 = arith.constant 0 : index
    %c0_63 = arith.constant 0 : index
    %c0_64 = arith.constant 0 : index
    %135 = vector.load %arg3[%c2_61, %c0_62, %c0_63, %c0_64] : memref<3x3x128x128xbf16, #tpu.memory_space<vmem>>, vector<1x1x128x128xbf16>
    %136 = vector.shape_cast %135 : vector<1x1x128x128xbf16> to vector<128x128xbf16>
    %cst_65 = arith.constant dense<0.000000e+00> : vector<10x128xf32>
    %137 = tpu.matmul %134, %136, %cst_65 {dimension_numbers = #tpu.dot_dimension_numbers<[1], [0], [0], [1], [0, 0, 1, 1], [], []>} : vector<10x128xbf16>, vector<128x128xbf16>, vector<10x128xf32> -> vector<10x128xf32>
    %138 = vector.extract_strided_slice %133 {offsets = [1, 0], sizes = [10, 128], strides = [1, 1]} : vector<12x128xbf16> to vector<10x128xbf16>
    %c2_66 = arith.constant 2 : index
    %c1_67 = arith.constant 1 : index
    %c0_68 = arith.constant 0 : index
    %c0_69 = arith.constant 0 : index
    %139 = vector.load %arg3[%c2_66, %c1_67, %c0_68, %c0_69] : memref<3x3x128x128xbf16, #tpu.memory_space<vmem>>, vector<1x1x128x128xbf16>
    %140 = vector.shape_cast %139 : vector<1x1x128x128xbf16> to vector<128x128xbf16>
    %cst_70 = arith.constant dense<0.000000e+00> : vector<10x128xf32>
    %141 = tpu.matmul %138, %140, %cst_70 {dimension_numbers = #tpu.dot_dimension_numbers<[1], [0], [0], [1], [0, 0, 1, 1], [], []>} : vector<10x128xbf16>, vector<128x128xbf16>, vector<10x128xf32> -> vector<10x128xf32>
    %142 = arith.addf %137, %141 : vector<10x128xf32>
    %143 = vector.extract_strided_slice %133 {offsets = [2, 0], sizes = [10, 128], strides = [1, 1]} : vector<12x128xbf16> to vector<10x128xbf16>
    %c2_71 = arith.constant 2 : index
    %c2_72 = arith.constant 2 : index
    %c0_73 = arith.constant 0 : index
    %c0_74 = arith.constant 0 : index
    %144 = vector.load %arg3[%c2_71, %c2_72, %c0_73, %c0_74] : memref<3x3x128x128xbf16, #tpu.memory_space<vmem>>, vector<1x1x128x128xbf16>
    %145 = vector.shape_cast %144 : vector<1x1x128x128xbf16> to vector<128x128xbf16>
    %cst_75 = arith.constant dense<0.000000e+00> : vector<10x128xf32>
    %146 = tpu.matmul %143, %145, %cst_75 {dimension_numbers = #tpu.dot_dimension_numbers<[1], [0], [0], [1], [0, 0, 1, 1], [], []>} : vector<10x128xbf16>, vector<128x128xbf16>, vector<10x128xf32> -> vector<10x128xf32>
    %147 = arith.addf %142, %146 : vector<10x128xf32>
    %c2_76 = arith.constant 2 : index
    %c0_77 = arith.constant 0 : index
    %c0_78 = arith.constant 0 : index
    %148 = vector.load %arg5[%c2_76, %c0_77, %c0_78] : memref<4x1x128xf32, #tpu.memory_space<vmem>>, vector<1x1x128xf32>
    %149 = vector.shape_cast %148 : vector<1x1x128xf32> to vector<1x128xf32>
    %150 = vector.broadcast %149 : vector<1x128xf32> to vector<10x128xf32>
    %151 = arith.addf %147, %150 : vector<10x128xf32>
    %cst_79 = arith.constant dense<0.000000e+00> : vector<10xf32>
    %152 = vector.multi_reduction <add>, %151, %cst_79 [1] : vector<10x128xf32> to vector<10xf32>
    %153 = vector.shape_cast %152 : vector<10xf32> to vector<10x1xf32>
    %cst_80 = arith.constant 3.125000e-02 : f32
    %154 = vector.broadcast %cst_80 : f32 to vector<10x1xf32>
    %155 = arith.mulf %153, %154 : vector<10x1xf32>
    %156 = vector.broadcast %155 : vector<10x1xf32> to vector<10x128xf32>
    %157 = arith.subf %151, %156 : vector<10x128xf32>
    %158 = arith.mulf %157, %157 : vector<10x128xf32>
    %cst_81 = arith.constant dense<0.000000e+00> : vector<10xf32>
    %159 = vector.multi_reduction <add>, %158, %cst_81 [1] : vector<10x128xf32> to vector<10xf32>
    %160 = vector.shape_cast %159 : vector<10xf32> to vector<10x1xf32>
    %cst_82 = arith.constant 3.125000e-02 : f32
    %161 = vector.broadcast %cst_82 : f32 to vector<10x1xf32>
    %162 = arith.mulf %160, %161 : vector<10x1xf32>
    %163 = arith.mulf %155, %155 : vector<10x1xf32>
    %cst_83 = arith.constant 3.000000e+00 : f32
    %164 = vector.broadcast %cst_83 : f32 to vector<10x1xf32>
    %165 = arith.mulf %164, %163 : vector<10x1xf32>
    %166 = arith.subf %162, %165 : vector<10x1xf32>
    %cst_84 = arith.constant 0.000000e+00 : f32
    %167 = vector.broadcast %cst_84 : f32 to vector<10x1xf32>
    %168 = arith.maximumf %166, %167 : vector<10x1xf32>
    %cst_85 = arith.constant 9.99999974E-6 : f32
    %169 = vector.broadcast %cst_85 : f32 to vector<10x1xf32>
    %170 = arith.addf %168, %169 : vector<10x1xf32>
    %171 = math.rsqrt %170 : vector<10x1xf32>
    %172 = vector.broadcast %171 : vector<10x1xf32> to vector<10x128xf32>
    %173 = arith.mulf %157, %172 : vector<10x128xf32>
    %174 = vector.extract_strided_slice %4 {offsets = [4, 0], sizes = [1, 128], strides = [1, 1]} : vector<8x128xf32> to vector<1x128xf32>
    %175 = vector.broadcast %174 : vector<1x128xf32> to vector<10x128xf32>
    %176 = arith.mulf %173, %175 : vector<10x128xf32>
    %177 = vector.extract_strided_slice %4 {offsets = [5, 0], sizes = [1, 128], strides = [1, 1]} : vector<8x128xf32> to vector<1x128xf32>
    %178 = vector.broadcast %177 : vector<1x128xf32> to vector<10x128xf32>
    %179 = arith.addf %176, %178 : vector<10x128xf32>
    %cst_86 = arith.constant 0.000000e+00 : f32
    %180 = vector.broadcast %cst_86 : f32 to vector<10x128xf32>
    %181 = arith.maximumf %179, %180 : vector<10x128xf32>
    %c4_i32_87 = arith.constant 4 : i32
    %182 = arith.subi %0, %c4_i32_87 : i32
    %c3_i32 = arith.constant 3 : i32
    %183 = arith.addi %182, %c3_i32 : i32
    %184 = tpu.iota {dimensions = array<i32: 0>} : vector<10x1xi32>
    %185 = vector.broadcast %183 : i32 to vector<10x1xi32>
    %186 = arith.addi %185, %184 : vector<10x1xi32>
    %c0_i32_88 = arith.constant 0 : i32
    %187 = vector.broadcast %c0_i32_88 : i32 to vector<10x1xi32>
    %188 = arith.cmpi sge, %186, %187 : vector<10x1xi32>
    %c8_i32_89 = arith.constant 8 : i32
    %189 = vector.broadcast %c8_i32_89 : i32 to vector<10x1xi32>
    %190 = arith.cmpi slt, %186, %189 : vector<10x1xi32>
    %191 = arith.andi %188, %190 : vector<10x1xi1>
    %cst_90 = arith.constant 0.000000e+00 : f32
    %192 = vector.shape_cast %191 : vector<10x1xi1> to vector<10x1xi1>
    %193 = vector.broadcast %192 : vector<10x1xi1> to vector<10x128xi1>
    %194 = vector.broadcast %cst_90 : f32 to vector<10x128xf32>
    %195 = arith.select %193, %181, %194 : vector<10x128xi1>, vector<10x128xf32>
    %196 = arith.truncf %195 : vector<10x128xf32> to vector<10x128xbf16>
    %197 = vector.extract_strided_slice %132 {offsets = [2, 0], sizes = [8, 128], strides = [1, 1]} : vector<12x128xf32> to vector<8x128xf32>
    %198 = vector.extract_strided_slice %196 {offsets = [0, 0], sizes = [8, 128], strides = [1, 1]} : vector<10x128xbf16> to vector<8x128xbf16>
    %c0_91 = arith.constant 0 : index
    %c0_92 = arith.constant 0 : index
    %c0_93 = arith.constant 0 : index
    %c0_94 = arith.constant 0 : index
    %199 = vector.load %arg4[%c0_91, %c0_92, %c0_93, %c0_94] : memref<2x3x128x128xbf16, #tpu.memory_space<vmem>>, vector<1x1x128x128xbf16>
    %200 = vector.shape_cast %199 : vector<1x1x128x128xbf16> to vector<128x128xbf16>
    %cst_95 = arith.constant dense<0.000000e+00> : vector<8x128xf32>
    %201 = tpu.matmul %198, %200, %cst_95 {dimension_numbers = #tpu.dot_dimension_numbers<[1], [0], [0], [1], [0, 0, 1, 1], [], []>} : vector<8x128xbf16>, vector<128x128xbf16>, vector<8x128xf32> -> vector<8x128xf32>
    %202 = vector.extract_strided_slice %196 {offsets = [1, 0], sizes = [8, 128], strides = [1, 1]} : vector<10x128xbf16> to vector<8x128xbf16>
    %c0_96 = arith.constant 0 : index
    %c1_97 = arith.constant 1 : index
    %c0_98 = arith.constant 0 : index
    %c0_99 = arith.constant 0 : index
    %203 = vector.load %arg4[%c0_96, %c1_97, %c0_98, %c0_99] : memref<2x3x128x128xbf16, #tpu.memory_space<vmem>>, vector<1x1x128x128xbf16>
    %204 = vector.shape_cast %203 : vector<1x1x128x128xbf16> to vector<128x128xbf16>
    %cst_100 = arith.constant dense<0.000000e+00> : vector<8x128xf32>
    %205 = tpu.matmul %202, %204, %cst_100 {dimension_numbers = #tpu.dot_dimension_numbers<[1], [0], [0], [1], [0, 0, 1, 1], [], []>} : vector<8x128xbf16>, vector<128x128xbf16>, vector<8x128xf32> -> vector<8x128xf32>
    %206 = arith.addf %201, %205 : vector<8x128xf32>
    %207 = vector.extract_strided_slice %196 {offsets = [2, 0], sizes = [8, 128], strides = [1, 1]} : vector<10x128xbf16> to vector<8x128xbf16>
    %c0_101 = arith.constant 0 : index
    %c2_102 = arith.constant 2 : index
    %c0_103 = arith.constant 0 : index
    %c0_104 = arith.constant 0 : index
    %208 = vector.load %arg4[%c0_101, %c2_102, %c0_103, %c0_104] : memref<2x3x128x128xbf16, #tpu.memory_space<vmem>>, vector<1x1x128x128xbf16>
    %209 = vector.shape_cast %208 : vector<1x1x128x128xbf16> to vector<128x128xbf16>
    %cst_105 = arith.constant dense<0.000000e+00> : vector<8x128xf32>
    %210 = tpu.matmul %207, %209, %cst_105 {dimension_numbers = #tpu.dot_dimension_numbers<[1], [0], [0], [1], [0, 0, 1, 1], [], []>} : vector<8x128xbf16>, vector<128x128xbf16>, vector<8x128xf32> -> vector<8x128xf32>
    %211 = arith.addf %206, %210 : vector<8x128xf32>
    %c3 = arith.constant 3 : index
    %c0_106 = arith.constant 0 : index
    %c0_107 = arith.constant 0 : index
    %212 = vector.load %arg5[%c3, %c0_106, %c0_107] : memref<4x1x128xf32, #tpu.memory_space<vmem>>, vector<1x1x128xf32>
    %213 = vector.shape_cast %212 : vector<1x1x128xf32> to vector<1x128xf32>
    %214 = vector.broadcast %213 : vector<1x128xf32> to vector<8x128xf32>
    %215 = arith.addf %211, %214 : vector<8x128xf32>
    %cst_108 = arith.constant dense<0.000000e+00> : vector<8xf32>
    %216 = vector.multi_reduction <add>, %215, %cst_108 [1] : vector<8x128xf32> to vector<8xf32>
    %217 = vector.shape_cast %216 : vector<8xf32> to vector<8x1xf32>
    %cst_109 = arith.constant 3.125000e-02 : f32
    %218 = vector.broadcast %cst_109 : f32 to vector<8x1xf32>
    %219 = arith.mulf %217, %218 : vector<8x1xf32>
    %220 = vector.broadcast %219 : vector<8x1xf32> to vector<8x128xf32>
    %221 = arith.subf %215, %220 : vector<8x128xf32>
    %222 = arith.mulf %221, %221 : vector<8x128xf32>
    %cst_110 = arith.constant dense<0.000000e+00> : vector<8xf32>
    %223 = vector.multi_reduction <add>, %222, %cst_110 [1] : vector<8x128xf32> to vector<8xf32>
    %224 = vector.shape_cast %223 : vector<8xf32> to vector<8x1xf32>
    %cst_111 = arith.constant 3.125000e-02 : f32
    %225 = vector.broadcast %cst_111 : f32 to vector<8x1xf32>
    %226 = arith.mulf %224, %225 : vector<8x1xf32>
    %227 = arith.mulf %219, %219 : vector<8x1xf32>
    %cst_112 = arith.constant 3.000000e+00 : f32
    %228 = vector.broadcast %cst_112 : f32 to vector<8x1xf32>
    %229 = arith.mulf %228, %227 : vector<8x1xf32>
    %230 = arith.subf %226, %229 : vector<8x1xf32>
    %cst_113 = arith.constant 0.000000e+00 : f32
    %231 = vector.broadcast %cst_113 : f32 to vector<8x1xf32>
    %232 = arith.maximumf %230, %231 : vector<8x1xf32>
    %cst_114 = arith.constant 9.99999974E-6 : f32
    %233 = vector.broadcast %cst_114 : f32 to vector<8x1xf32>
    %234 = arith.addf %232, %233 : vector<8x1xf32>
    %235 = math.rsqrt %234 : vector<8x1xf32>
    %236 = vector.broadcast %235 : vector<8x1xf32> to vector<8x128xf32>
    %237 = arith.mulf %221, %236 : vector<8x128xf32>
    %238 = vector.extract_strided_slice %4 {offsets = [6, 0], sizes = [1, 128], strides = [1, 1]} : vector<8x128xf32> to vector<1x128xf32>
    %239 = vector.broadcast %238 : vector<1x128xf32> to vector<8x128xf32>
    %240 = arith.mulf %237, %239 : vector<8x128xf32>
    %241 = vector.extract_strided_slice %4 {offsets = [7, 0], sizes = [1, 128], strides = [1, 1]} : vector<8x128xf32> to vector<1x128xf32>
    %242 = vector.broadcast %241 : vector<1x128xf32> to vector<8x128xf32>
    %243 = arith.addf %240, %242 : vector<8x128xf32>
    %cst_115 = arith.constant 0.000000e+00 : f32
    %244 = vector.broadcast %cst_115 : f32 to vector<8x128xf32>
    %245 = arith.maximumf %243, %244 : vector<8x128xf32>
    %246 = arith.addf %245, %197 : vector<8x128xf32>
    %247 = vector.extract_strided_slice %196 {offsets = [0, 0], sizes = [8, 128], strides = [1, 1]} : vector<10x128xbf16> to vector<8x128xbf16>
    %c1_116 = arith.constant 1 : index
    %c0_117 = arith.constant 0 : index
    %c0_118 = arith.constant 0 : index
    %c0_119 = arith.constant 0 : index
    %248 = vector.load %arg4[%c1_116, %c0_117, %c0_118, %c0_119] : memref<2x3x128x128xbf16, #tpu.memory_space<vmem>>, vector<1x1x128x128xbf16>
    %249 = vector.shape_cast %248 : vector<1x1x128x128xbf16> to vector<128x128xbf16>
    %cst_120 = arith.constant dense<0.000000e+00> : vector<8x128xf32>
    %250 = tpu.matmul %247, %249, %cst_120 {dimension_numbers = #tpu.dot_dimension_numbers<[1], [0], [0], [1], [0, 0, 1, 1], [], []>} : vector<8x128xbf16>, vector<128x128xbf16>, vector<8x128xf32> -> vector<8x128xf32>
    %251 = vector.extract_strided_slice %196 {offsets = [1, 0], sizes = [8, 128], strides = [1, 1]} : vector<10x128xbf16> to vector<8x128xbf16>
    %c1_121 = arith.constant 1 : index
    %c1_122 = arith.constant 1 : index
    %c0_123 = arith.constant 0 : index
    %c0_124 = arith.constant 0 : index
    %252 = vector.load %arg4[%c1_121, %c1_122, %c0_123, %c0_124] : memref<2x3x128x128xbf16, #tpu.memory_space<vmem>>, vector<1x1x128x128xbf16>
    %253 = vector.shape_cast %252 : vector<1x1x128x128xbf16> to vector<128x128xbf16>
    %cst_125 = arith.constant dense<0.000000e+00> : vector<8x128xf32>
    %254 = tpu.matmul %251, %253, %cst_125 {dimension_numbers = #tpu.dot_dimension_numbers<[1], [0], [0], [1], [0, 0, 1, 1], [], []>} : vector<8x128xbf16>, vector<128x128xbf16>, vector<8x128xf32> -> vector<8x128xf32>
    %255 = arith.addf %250, %254 : vector<8x128xf32>
    %256 = vector.extract_strided_slice %196 {offsets = [2, 0], sizes = [8, 128], strides = [1, 1]} : vector<10x128xbf16> to vector<8x128xbf16>
    %c1_126 = arith.constant 1 : index
    %c2_127 = arith.constant 2 : index
    %c0_128 = arith.constant 0 : index
    %c0_129 = arith.constant 0 : index
    %257 = vector.load %arg4[%c1_126, %c2_127, %c0_128, %c0_129] : memref<2x3x128x128xbf16, #tpu.memory_space<vmem>>, vector<1x1x128x128xbf16>
    %258 = vector.shape_cast %257 : vector<1x1x128x128xbf16> to vector<128x128xbf16>
    %cst_130 = arith.constant dense<0.000000e+00> : vector<8x128xf32>
    %259 = tpu.matmul %256, %258, %cst_130 {dimension_numbers = #tpu.dot_dimension_numbers<[1], [0], [0], [1], [0, 0, 1, 1], [], []>} : vector<8x128xbf16>, vector<128x128xbf16>, vector<8x128xf32> -> vector<8x128xf32>
    %260 = arith.addf %255, %259 : vector<8x128xf32>
    %c3_131 = arith.constant 3 : index
    %c0_132 = arith.constant 0 : index
    %c0_133 = arith.constant 0 : index
    %261 = vector.load %arg5[%c3_131, %c0_132, %c0_133] : memref<4x1x128xf32, #tpu.memory_space<vmem>>, vector<1x1x128xf32>
    %262 = vector.shape_cast %261 : vector<1x1x128xf32> to vector<1x128xf32>
    %263 = vector.broadcast %262 : vector<1x128xf32> to vector<8x128xf32>
    %264 = arith.addf %260, %263 : vector<8x128xf32>
    %cst_134 = arith.constant dense<0.000000e+00> : vector<8xf32>
    %265 = vector.multi_reduction <add>, %264, %cst_134 [1] : vector<8x128xf32> to vector<8xf32>
    %266 = vector.shape_cast %265 : vector<8xf32> to vector<8x1xf32>
    %cst_135 = arith.constant 3.125000e-02 : f32
    %267 = vector.broadcast %cst_135 : f32 to vector<8x1xf32>
    %268 = arith.mulf %266, %267 : vector<8x1xf32>
    %269 = vector.broadcast %268 : vector<8x1xf32> to vector<8x128xf32>
    %270 = arith.subf %264, %269 : vector<8x128xf32>
    %271 = arith.mulf %270, %270 : vector<8x128xf32>
    %cst_136 = arith.constant dense<0.000000e+00> : vector<8xf32>
    %272 = vector.multi_reduction <add>, %271, %cst_136 [1] : vector<8x128xf32> to vector<8xf32>
    %273 = vector.shape_cast %272 : vector<8xf32> to vector<8x1xf32>
    %cst_137 = arith.constant 3.125000e-02 : f32
    %274 = vector.broadcast %cst_137 : f32 to vector<8x1xf32>
    %275 = arith.mulf %273, %274 : vector<8x1xf32>
    %276 = arith.mulf %268, %268 : vector<8x1xf32>
    %cst_138 = arith.constant 3.000000e+00 : f32
    %277 = vector.broadcast %cst_138 : f32 to vector<8x1xf32>
    %278 = arith.mulf %277, %276 : vector<8x1xf32>
    %279 = arith.subf %275, %278 : vector<8x1xf32>
    %cst_139 = arith.constant 0.000000e+00 : f32
    %280 = vector.broadcast %cst_139 : f32 to vector<8x1xf32>
    %281 = arith.maximumf %279, %280 : vector<8x1xf32>
    %cst_140 = arith.constant 9.99999974E-6 : f32
    %282 = vector.broadcast %cst_140 : f32 to vector<8x1xf32>
    %283 = arith.addf %281, %282 : vector<8x1xf32>
    %284 = math.rsqrt %283 : vector<8x1xf32>
    %285 = vector.broadcast %284 : vector<8x1xf32> to vector<8x128xf32>
    %286 = arith.mulf %270, %285 : vector<8x128xf32>
    %287 = vector.extract_strided_slice %4 {offsets = [6, 0], sizes = [1, 128], strides = [1, 1]} : vector<8x128xf32> to vector<1x128xf32>
    %288 = vector.broadcast %287 : vector<1x128xf32> to vector<8x128xf32>
    %289 = arith.mulf %286, %288 : vector<8x128xf32>
    %290 = vector.extract_strided_slice %4 {offsets = [7, 0], sizes = [1, 128], strides = [1, 1]} : vector<8x128xf32> to vector<1x128xf32>
    %291 = vector.broadcast %290 : vector<1x128xf32> to vector<8x128xf32>
    %292 = arith.addf %289, %291 : vector<8x128xf32>
    %cst_141 = arith.constant 0.000000e+00 : f32
    %293 = vector.broadcast %cst_141 : f32 to vector<8x128xf32>
    %294 = arith.maximumf %292, %293 : vector<8x128xf32>
    %295 = arith.addf %294, %197 : vector<8x128xf32>
    %296 = tpu.concatenate %246, %295 in 1 : vector<8x128xf32>, vector<8x128xf32> -> vector<8x256xf32>
    %c0_142 = arith.constant 0 : index
    %c0_143 = arith.constant 0 : index
    %c0_144 = arith.constant 0 : index
    %297 = vector.load %arg7[%c0_142, %c0_143, %c0_144] : memref<1x8x256xf32, #tpu.memory_space<vmem>>, vector<1x8x256xf32>
    %298 = vector.shape_cast %297 : vector<1x8x256xf32> to vector<8x256xf32>
    %299 = vector.shape_cast %296 : vector<8x256xf32> to vector<1x8x256xf32>
    tpu.vector_store %arg7[%c0_142, %c0_143, %c0_144], %299 {strides = array<i32>} : memref<1x8x256xf32, #tpu.memory_space<vmem>>, vector<1x8x256xf32>,
    return
  }
  func.func @transform_0(%arg0: i32, %arg1: i32) -> (i32, i32, i32, i32) {
    %c0_i32 = arith.constant 0 : i32
    %c0_i32_0 = arith.constant 0 : i32
    %c0_i32_1 = arith.constant 0 : i32
    return %arg0, %arg1, %c0_i32, %c0_i32_0 : i32, i32, i32, i32
  }
  func.func @transform_1(%arg0: i32, %arg1: i32) -> (i32, i32, i32, i32) {
    %c0_i32 = arith.constant 0 : i32
    %c0_i32_0 = arith.constant 0 : i32
    %c0_i32_1 = arith.constant 0 : i32
    %c0_i32_2 = arith.constant 0 : i32
    %c0_i32_3 = arith.constant 0 : i32
    return %c0_i32, %c0_i32_0, %c0_i32_1, %c0_i32_2 : i32, i32, i32, i32
  }
  func.func @transform_2(%arg0: i32, %arg1: i32) -> (i32, i32, i32, i32) {
    %c0_i32 = arith.constant 0 : i32
    %c0_i32_0 = arith.constant 0 : i32
    %c0_i32_1 = arith.constant 0 : i32
    %c0_i32_2 = arith.constant 0 : i32
    %c0_i32_3 = arith.constant 0 : i32
    return %c0_i32, %c0_i32_0, %c0_i32_1, %c0_i32_2 : i32, i32, i32, i32
  }
  func.func @transform_3(%arg0: i32, %arg1: i32) -> (i32, i32, i32) {
    %c0_i32 = arith.constant 0 : i32
    %c0_i32_0 = arith.constant 0 : i32
    %c0_i32_1 = arith.constant 0 : i32
    %c0_i32_2 = arith.constant 0 : i32
    return %c0_i32, %c0_i32_0, %c0_i32_1 : i32, i32, i32
  }
  func.func @transform_4(%arg0: i32, %arg1: i32) -> (i32, i32, i32) {
    %c0_i32 = arith.constant 0 : i32
    %c0_i32_0 = arith.constant 0 : i32
    %c0_i32_1 = arith.constant 0 : i32
    return %arg0, %c0_i32, %c0_i32_0 : i32, i32, i32
  }
  func.func @transform_5(%arg0: i32, %arg1: i32) -> (i32, i32, i32) {
    %c0_i32 = arith.constant 0 : i32
    %c0_i32_0 = arith.constant 0 : i32
    return %arg0, %arg1, %c0_i32 : i32, i32, i32
  }
}

</mosaic_0001>

<bundles_post_ra>
// kernel: dec_vc_block_forward.1
= control target key start
LH: loop header
LB: loop body
LE: loop exit
PB: predicated region body
PF: predicated region fallthrough
CT: control target
= control target key end

     0   :  { %s3351_s18 = smov 0   ;;  %s3353_s19 = smov 0   ;;  %s4011_s0 = inlined_call_operand.vmem [shape: bf16[2,1,16,128], index: 0, kind: input, shape index: {}]   ;;  %s4012_s1 = inlined_call_operand.vmem [shape: bf16[3,3,128,128], index: 1, kind: input, shape index: {}]   ;;  %s4013_s2 = inlined_call_operand.vmem [shape: bf16[2,3,128,128], index: 2, kind: input, shape index: {}]   ;;  %s4014_s3 = inlined_call_operand.vmem [shape: f32[4,1,128], index: 3, kind: input, shape index: {}]   ;;  %s4015_s4 = inlined_call_operand.vmem [shape: f32[2,8,128], index: 4, kind: input, shape index: {}]   ;;  %s4016_s5 = inlined_call_operand.vmem [shape: f32[2,8,256], index: 5, kind: output, shape index: {}]  }
   0x1   :  { %s3355_s20 = smov 0  }
   0x2 LB: > { %s27_s21 = sadd.s32 1, %s3313_s19  ;;  %p2336_p0 = scmp.ge.s32.totalorder %s3317_s20, 1  ;;  %s3317_s20 = sphi %s3355_s20, %s15_s20   ;;  %s3313_s19 = sphi %s3353_s19, %s4020_s19   ;;  %s3309_s18 = sphi %s3351_s18, %s4019_s18  }
   0x3   : > { %p29_p1 = scmp.ge.s32.totalorder %s27_s21, 2  ;;  %p216_p2 = scmp.lt.s32.totalorder %s3317_s20, 3 }
   0x5   : > { %s4022_s21 = smov (%p29_p1, %s27_s21), 0  ;;  %p217_p3 = pnand %p2336_p0, %p216_p2 }
   0x6   : > { %v3155_v0 = vld [vmem:[%s4012_s1 + $0x40] sm:$0xff] (!%p217_p3)   ;;  %v3319_v1 = vmov (!%p217_p3), 0.0   ;;  %v3157_v3 = vld [vmem:[%s4012_s1 + $0x48] sm:$0xff] (!%p217_p3)   ;;  %vm3320_vm0 = vmmov (!%p217_p3), 0   ;;  %p256_p4 = scmp.lt.s32.totalorder (!%p217_p3), %s3309_s18, 1  ;;  %v3159_v5 = vld [vmem:[%s4012_s1 + $0x50] sm:$0xff] (!%p217_p3)  }
   0x7   : > { %220 = sbr.rel (%p217_p3) target bundleno = 2390 (0x956), region = 40  ;;  %2829 = vmatprep.subr.bf16.mxu0 (!%p217_p3), %v3319_v1  ;;  %2849 = vmatprep.subr.bf16.mxu1 (!%p217_p3), %v3319_v1  ;;  %v3156_v2 = vld [vmem:[%s4012_s1] sm:$0xff] (!%p217_p3)   ;;  %v3158_v4 = vld [vmem:[%s4012_s1 + $0x8] sm:$0xff] (!%p217_p3)   ;;  %v3160_v6 = vld [vmem:[%s4012_s1 + $0x10] sm:$0xff] (!%p217_p3)   ;;  %vm629_vm1 = vcmask (!%p217_p3), 1045504   ;;  %vm1037_vm5 = vcmask (!%p217_p3), 1043456  }
   0x8   : > { %2830 = vmatpush3.bf16.msra.mxu0 (!%p217_p3), %v3155_v0  ;;  %2845 = vmatprep.mubr.msk.bf16.mxu0 (!%p217_p3), %vm3320_vm0, %v3319_v1  ;;  %v3161_v7 = vld [vmem:[%s4012_s1 + $0x58] sm:$0xff] (!%p217_p3)   ;;  %v3163_v9 = vld [vmem:[%s4012_s1 + $0x60] sm:$0xff] (!%p217_p3)   ;;  %v3165_v12 = vld [vmem:[%s4012_s1 + $0x68] sm:$0xff] (!%p217_p3)   ;;  %vm1086_vm6 = vcmask (!%p217_p3), 1041408  }
   0x9   : > { %2850 = vmatpush3.bf16.msra.mxu1 (!%p217_p3), %v3156_v2  ;;  %2831 = vmatprep.subr.bf16.mxu0 (!%p217_p3), %v3319_v1  ;;  %v3162_v8 = vld [vmem:[%s4012_s1 + $0x18] sm:$0xff] (!%p217_p3)   ;;  %v3164_v10 = vld [vmem:[%s4012_s1 + $0x20] sm:$0xff] (!%p217_p3)   ;;  %v3166_v13 = vld [vmem:[%s4012_s1 + $0x28] sm:$0xff] (!%p217_p3)  }
   0xa   : > { %2851 = vmatprep.subr.bf16.mxu1 (!%p217_p3), %v3319_v1  ;;  %2865 = vmatprep.mubr.msk.bf16.mxu1 (!%p217_p3), %vm3320_vm0, %v3319_v1  ;;  %v3167_v15 = vld [vmem:[%s4012_s1 + $0x70] sm:$0xff] (!%p217_p3)   ;;  %v3169_v18 = vld [vmem:[%s4012_s1 + $0x78] sm:$0xff] (!%p217_p3)   ;;  %v3172_v22 = vld [vmem:[%s4012_s1 + $0x80] sm:$0xff] (!%p217_p3)  }
   0xb   : > { %v3168_v16 = vld [vmem:[%s4012_s1 + $0x30] sm:$0xff] (!%p217_p3)   ;;  %v3170_v21 = vld [vmem:[%s4012_s1 + $0x38] sm:$0xff] (!%p217_p3)   ;;  %v3173_v24 = vld [vmem:[%s4012_s1 + $0x88] sm:$0xff] (!%p217_p3)  }
   0xc   : > { %2832 = vmatpush3.bf16.msra.mxu0 (!%p217_p3), %v3157_v3  ;;  %v3174_v25 = vld [vmem:[%s4012_s1 + $0x90] sm:$0xff] (!%p217_p3)   ;;  %v3175_v26 = vld [vmem:[%s4012_s1 + $0x98] sm:$0xff] (!%p217_p3)   ;;  %v3176_v27 = vld [vmem:[%s4012_s1 + $0xa0] sm:$0xff] (!%p217_p3)  }
   0xd   : > { %2852 = vmatpush3.bf16.msra.mxu1 (!%p217_p3), %v3158_v4  ;;  %2833 = vmatprep.subr.bf16.mxu0 (!%p217_p3), %v3319_v1  ;;  %v3177_v28 = vld [vmem:[%s4012_s1 + $0xa8] sm:$0xff] (!%p217_p3)   ;;  %v3178_v29 = vld [vmem:[%s4012_s1 + $0xb0] sm:$0xff] (!%p217_p3)   ;;  %v3179_v30 = vld [vmem:[%s4012_s1 + $0xb8] sm:$0xff] (!%p217_p3)  }
   0xe   : > { %s4024_s18 = smov (!%p256_p4, %s3309_s18), 1  ;;  %2853 = vmatprep.subr.bf16.mxu1 %v3319_v1  ;;  %v2399_v47 = vld [vmem:[%s4014_s3] ss:$0 sm:$0xff]  ;;  %v3181_v61 = vld [vmem:[%s4012_s1 + $0xc8] sm:$0xff]   ;;  %v3183_v63 = vld [vmem:[%s4012_s1 + $0xd0] sm:$0xff]  }
   0xf   : > { %s2692_s11 = sshll.u32 %s4024_s18, 3  ;;  %v3180_v60 = vld [vmem:[%s4012_s1 + $0xc0] sm:$0xff]   ;;  %v3184_v0 = vld [vmem:[%s4012_s1 + $0x108] sm:$0xff]   ;;  %v3185_v2 = vld [vmem:[%s4012_s1 + $0xd8] sm:$0xff]   ;;  %s2693_s17 = sshll.u32 %s4024_s18, 4 }
  0x10   : > { %2834 = vmatpush3.bf16.msra.mxu0 %v3159_v5  ;;  %s3413_s16 = scalar_lea.vmem %s4011_s0, %s2692_s11  ;;  %v3182_v62 = vld [vmem:[%s4012_s1 + $0x100] sm:$0xff]   ;;  %v3186_v3 = vld [vmem:[%s4012_s1 + $0x110] sm:$0xff]   ;;  %v3188_v5 = vld [vmem:[%s4012_s1 + $0x118] sm:$0xff]   ;;  %s3572_s7 = scalar_lea.vmem %s4015_s4, %s2692_s11 }
  0x11   : > { %2854 = vmatpush3.bf16.msra.mxu1 %v3160_v6  ;;  %2835 = vmatprep.subr.bf16.mxu0 %v3319_v1  ;;  %v280_v11 = vld [vmem:[%s3413_s16] sm:$0xff]   ;;  %v3189_v6 = vld [vmem:[%s4012_s1 + $0xe8] sm:$0xff]   ;;  %s277_s24 = scalar_lea.vmem %s4016_s5, %s2693_s17 }
  0x12   : > { %2855 = vmatprep.subr.bf16.mxu1 %v3319_v1  ;;  %v324_v14 = vshll.u32 %v280_v11, 16  ;;  %v322_v17 = vshrl.u32 %v280_v11, 16  ;;  %v525_v20 = vrot.slane %v280_v11, 1  ;;  %v3187_v4 = vld [vmem:[%s4012_s1 + $0xe0] sm:$0xff]  }
  0x14   : > { %2836 = vmatpush3.bf16.msra.mxu0 %v3161_v7  ;;  %v326_v19 = vrot.slane %v324_v14, 1  ;;  %v3190_v7 = vld [vmem:[%s4012_s1 + $0x120] sm:$0xff]  }
  0x15   : > { %2856 = vmatpush3.bf16.msra.mxu1 %v3162_v8  ;;  %2837 = vmatprep.subr.bf16.mxu0 %v3319_v1  ;;  %v3191_v8 = vld [vmem:[%s4012_s1 + $0xf0] sm:$0xff]  }
  0x16   : > { %2857 = vmatprep.subr.bf16.mxu1 %v3319_v1  ;;  %v327_v23 = vor.u32 %v326_v19, %v322_v17 }
  0x18   : > { %2838 = vmatpush3.bf16.msra.mxu0 %v3163_v9  ;;  %v3192_v9 = vld [vmem:[%s4012_s1 + $0x128] sm:$0xff]  }
  0x19   : > { %2858 = vmatpush3.bf16.msra.mxu1 %v3164_v10  ;;  %2839 = vmatprep.subr.bf16.mxu0 %v3319_v1  ;;  %v3193_v10 = vld [vmem:[%s4012_s1 + $0xf8] sm:$0xff]  }
  0x1a   : > { %2859 = vmatprep.subr.bf16.mxu1 %v3319_v1 }
  0x1c   : > { %2840 = vmatpush3.bf16.msra.mxu0 %v3165_v12  ;;  %v3195_v12 = vld [vmem:[%s4012_s1 + $0x138] sm:$0xff]  }
  0x1d   : > { %2860 = vmatpush3.bf16.msra.mxu1 %v3166_v13  ;;  %2841 = vmatprep.subr.bf16.mxu0 %v3319_v1 }
  0x1e   : > { %2861 = vmatprep.subr.bf16.mxu1 %v3319_v1 }
  0x20   : > { %2842 = vmatpush3.bf16.msra.mxu0 %v3167_v15 }
  0x21   : > { %2862 = vmatpush3.bf16.msra.mxu1 %v3168_v16  ;;  %2843 = vmatprep.subr.bf16.mxu0 %v3319_v1 }
  0x22   : > { %2863 = vmatprep.subr.bf16.mxu1 %v3319_v1 }
  0x24   : > { %2844 = vmatpush3.bf16.msra.mxu0 %v3169_v18 }
  0x25   : > { %2864 = vmatpush3.bf16.msra.mxu1 %v3170_v21  ;;  %2869 = vmatprep.subr.bf16.mxu0 %v3319_v1 }
  0x26   : > { %2889 = vmatprep.subr.bf16.mxu1 %v3319_v1 }
  0x27   : > { %2846 = vmatmul.mubr.bf16.vlgmr.msra.gmra.mrb[0].mxu0 %v327_v23  ;;  %v660_v23 = vlaneseq }
  0x28   : > { %2866 = vmatmul.mubr.bf16.vlgmr.msra.gmra.mrb[0].mxu1 %v280_v11  ;;  %2870 = vmatpush3.bf16.msra.mxu0 %v3172_v22  ;;  %v3194_v11 = vld [vmem:[%s4012_s1 + $0x130] sm:$0xff]  }
  0x29   : > { %2871 = vmatprep.subr.bf16.mxu0 %v3319_v1  ;;  %2885 = vmatprep.mubr.msk.bf16.mxu0 %vm3320_vm0, %v3319_v1 }
  0x2a   : > { %2905 = vmatprep.mubr.msk.bf16.mxu1 %vm3320_vm0, %v3319_v1  ;;  %2890 = vmatpush3.bf16.msra.mxu1 %v3182_v62  ;;  %v3203_v62 = vld [vmem:[%s4012_s1 + $0x178] sm:$0xff]  }
  0x2b   : > { %2891 = vmatprep.subr.bf16.mxu1 %v3319_v1 }
  0x2c   : > { %2872 = vmatpush3.bf16.msra.mxu0 %v3173_v24 }
  0x2d   : > { %2873 = vmatprep.subr.bf16.mxu0 %v3319_v1 }
  0x2e   : > { %2892 = vmatpush3.bf16.msra.mxu1 %v3184_v0 }
  0x2f   : > { %2893 = vmatprep.subr.bf16.mxu1 %v3319_v1 }
  0x30   : > { %2874 = vmatpush3.bf16.msra.mxu0 %v3174_v25 }
  0x31   : > { %2875 = vmatprep.subr.bf16.mxu0 %v3319_v1 }
  0x32   : > { %2894 = vmatpush3.bf16.msra.mxu1 %v3186_v3 }
  0x33   : > { %2895 = vmatprep.subr.bf16.mxu1 %v3319_v1 }
  0x34   : > { %2876 = vmatpush3.bf16.msra.mxu0 %v3175_v26 }
  0x35   : > { %2877 = vmatprep.subr.bf16.mxu0 %v3319_v1 }
  0x36   : > { %2896 = vmatpush3.bf16.msra.mxu1 %v3188_v5 }
  0x37   : > { %2897 = vmatprep.subr.bf16.mxu1 %v3319_v1 }
  0x38   : > { %2878 = vmatpush3.bf16.msra.mxu0 %v3176_v27  ;;  %v3565_v27 = vshrl.u32 %v660_v23, 7 }
  0x39   : > { %2879 = vmatprep.subr.bf16.mxu0 %v3319_v1 }
  0x3a   : > { %2898 = vmatpush3.bf16.msra.mxu1 %v3190_v7 }
  0x3b   : > { %2899 = vmatprep.subr.bf16.mxu1 %v3319_v1 }
  0x3c   : > { %2880 = vmatpush3.bf16.msra.mxu0 %v3177_v28 }
  0x3d   : > { %2881 = vmatprep.subr.bf16.mxu0 %v3319_v1 }
  0x3e   : > { %2900 = vmatpush3.bf16.msra.mxu1 %v3192_v9 }
  0x3f   : > { %2901 = vmatprep.subr.bf16.mxu1 %v3319_v1 }
  0x40   : > { %2882 = vmatpush3.bf16.msra.mxu0 %v3178_v29  ;;  %v662_v29 = vsub.s32 0, %v3565_v27 }
  0x41   : > { %2883 = vmatprep.subr.bf16.mxu0 %v3319_v1 }
  0x42   : > { %2902 = vmatpush3.bf16.msra.mxu1 %v3194_v11 }
  0x43   : > { %2903 = vmatprep.subr.bf16.mxu1 %v3319_v1 }
  0x44   : > { %2884 = vmatpush3.bf16.msra.mxu0 %v3179_v30  ;;  %v3576_v30 = vld [vmem:[%s3572_s7] sm:$0xff] }
  0x45   : > { %2909 = vmatprep.subr.bf16.mxu0 %v3319_v1 }
  0x46   : > { %2904 = vmatpush3.bf16.msra.mxu1 %v3195_v12  ;;  %v2476_v12 = vld [vmem:[%s4014_s3 + $0x1] ss:$0 sm:$0xff] }
  0x47   : > { %2886 = vmatmul.mubr.bf16.vlgmr.msra.gmra.mrb[4].mxu0 %v525_v20  ;;  %2929 = vmatprep.subr.bf16.mxu1 %v3319_v1 }
  0x48   : > { %2925 = vmatprep.mubr.msk.bf16.mxu0 %vm3320_vm0, %v3319_v1  ;;  %2910 = vmatpush3.bf16.msra.mxu0 %v3180_v60  ;;  %v3201_v60 = vld [vmem:[%s4012_s1 + $0x168] sm:$0xff]  }
  0x49   : > { %2911 = vmatprep.subr.bf16.mxu0 %v3319_v1 }
  0x4c   : > { %2912 = vmatpush3.bf16.msra.mxu0 %v3181_v61  ;;  %v3202_v61 = vld [vmem:[%s4012_s1 + $0x170] sm:$0xff]  }
  0x4d   : > { %2913 = vmatprep.subr.bf16.mxu0 %v3319_v1 }
  0x50   : > { %2914 = vmatpush3.bf16.msra.mxu0 %v3183_v63 }
  0x51   : > { %2915 = vmatprep.subr.bf16.mxu0 %v3319_v1 }
  0x54   : > { %2916 = vmatpush3.bf16.msra.mxu0 %v3185_v2 }
  0x55   : > { %2917 = vmatprep.subr.bf16.mxu0 %v3319_v1 }
  0x58   : > { %2918 = vmatpush3.bf16.msra.mxu0 %v3187_v4 }
  0x59   : > { %2919 = vmatprep.subr.bf16.mxu0 %v3319_v1 }
  0x5c   : > { %2920 = vmatpush3.bf16.msra.mxu0 %v3189_v6 }
  0x5d   : > { %2921 = vmatprep.subr.bf16.mxu0 %v3319_v1 }
  0x60   : > { %2922 = vmatpush3.bf16.msra.mxu0 %v3191_v8 }
  0x61   : > { %2923 = vmatprep.subr.bf16.mxu0 %v3319_v1 }
  0x64   : > { %2924 = vmatpush3.bf16.msra.mxu0 %v3193_v10 }
  0x65   : > { %2949 = vmatprep.subr.bf16.mxu0 %v3319_v1 }
  0xfa   : > { %v411_v31 = vpop.f32.mrb[0].mxu0 }
  0xfb   : > { %v501_v32 = vpop.f32.mrb[0].mxu1  ;;  %v2847_v33 = vpop.f32.mrb[1].mxu0 }
  0xfc   : > { %v502_v34 = vadd.f32 %v501_v32, %v411_v31  ;;  %v2867_v35 = vpop.f32.mrb[1].mxu1  ;;  %v414_v36 = vpop.f32.mrb[2].mxu0  ;;  %v668_v31 = vsub.s32 1, %v3565_v27  ;;  %v663_v32 = vrot.slane %v3576_v30, %v662_v29 }
  0xfd   : > { %v504_v37 = vpop.f32.mrb[2].mxu1  ;;  %v2848_v38 = vpop.f32.mrb[3].mxu0 }
  0xfe   : > { %v505_v39 = vadd.f32 %v504_v37, %v414_v36  ;;  %v2868_v40 = vpop.f32.mrb[3].mxu1  ;;  %v669_v35 = vrot.slane %v3576_v30, %v668_v31  ;;  %v3583_v36 = vadd.s32 8, %v3565_v27 }
 0x11a   : > { %v609_v41 = vpop.f32.mrb[4].mxu0 }
 0x11b   : > { %v616_v42 = vadd.f32 %v609_v41, %v502_v34  ;;  %v2887_v43 = vpop.f32.mrb[5].mxu0  ;;  %v680_v41 = vadd.s32 4294967293, %v3583_v36 }
 0x11c   : > { %v612_v44 = vpop.f32.mrb[6].mxu0 }
 0x11d   : > { %v617_v45 = vadd.f32 %v612_v44, %v505_v39  ;;  %v2888_v46 = vpop.f32.mrb[7].mxu0  ;;  %v625_v50 = vadd.f32 %v2399_v47, %v616_v42  ;;  %v679_v42 = vadd.s32 4294967293, %v3565_v27  ;;  %vm684_vm2 = vcmp.lt.s32.totalorder %v680_v41, 8  ;;  %v3212_v41 = vld [vmem:[%s4012_s1 + $0x1d8] sm:$0xff]  }
 0x11f   : > { %v626_v48 = vadd.f32 %v2399_v47, %v617_v45  ;;  %vm681_vm3 = vcmp.ge.s32.totalorder %v679_v42, 0  ;;  %v3213_v42 = vld [vmem:[%s4012_s1 + $0x1a8] sm:$0xff]  }
 0x120   : > { %vm2448_vm4 = vmpackc.low %vm684_vm2, %vm681_vm3 }
 0x121   : > { %v630_v49 = vsel %vm629_vm1, %v626_v48, 0.0 }
 0x122   : > { %631 = vadd.xlane.f32.xlu0 %v630_v49 }
 0x126   : > { %627 = vadd.xlane.f32.xlu0 %v625_v50 }
 0x1af   : > { %v632_v51 = vpop.xlane.xlu0 %631 }
 0x1b0   : > { %v634_v52 = vmul.f32 0.03125, %v632_v51 }
 0x1b2   : > { %v3492_v55 = vsub.f32 %v626_v48, %v634_v52  ;;  %v647_v15 = vmul.f32 %v634_v52, %v634_v52 }
 0x1b3   : > { %v628_v53 = vpop.xlane.xlu0 %627 }
 0x1b4   : > { %v633_v54 = vmul.f32 0.03125, %v628_v53  ;;  %v638_v58 = vmul.f32 %v3492_v55, %v3492_v55  ;;  %v649_v20 = vmul.f32 3.0, %v647_v15 }
 0x1b6   : > { %v3494_v56 = vsub.f32 %v625_v50, %v633_v54  ;;  %v641_v59 = vsel %vm629_vm1, %v638_v58, 0.0  ;;  %v646_v13 = vmul.f32 %v633_v54, %v633_v54  ;;  %v3196_v54 = vld [vmem:[%s4012_s1 + $0x140] sm:$0xff]   ;;  %v3199_v58 = vld [vmem:[%s4012_s1 + $0x158] sm:$0xff]  }
 0x1b8   : > { %v637_v57 = vmul.f32 %v3494_v56, %v3494_v56  ;;  %v648_v16 = vmul.f32 3.0, %v646_v13 }
 0x1ba   : > { %639 = vadd.xlane.f32.xlu1 %v637_v57  ;;  %v3198_v57 = vld [vmem:[%s4012_s1 + $0x150] sm:$0xff]  }
 0x1be   : > { %642 = vadd.xlane.f32.xlu1 %v641_v59  ;;  %v3200_v59 = vld [vmem:[%s4012_s1 + $0x160] sm:$0xff]  }
 0x247   : > { %v640_v14 = vpop.xlane.xlu1 %639 }
 0x248   : > { %v644_v17 = vmul.f32 0.03125, %v640_v14 }
 0x24a   : > { %v650_v18 = vsub.f32 %v644_v17, %v648_v16 }
 0x24b   : > { %v643_v19 = vpop.xlane.xlu1 %642 }
 0x24c   : > { %v652_v21 = vmax.f32 %v650_v18, 0.0  ;;  %v645_v22 = vmul.f32 0.03125, %v643_v19 }
 0x24e   : > { %v654_v24 = vadd.f32 1e-05, %v652_v21  ;;  %v651_v25 = vsub.f32 %v645_v22, %v649_v20 }
 0x250   : > { %3277 = vrsqrt.f32 %v654_v24  ;;  %v653_v26 = vmax.f32 %v651_v25, 0.0 }
 0x252   : > { %v655_v28 = vadd.f32 1e-05, %v653_v26 }
 0x254   : > { %3279 = vrsqrt.f32 %v655_v28 }
 0x25a   : > { %v3278_v33 = vpop.eup %3277 }
 0x25b   : > { %v658_v34 = vmul.f32 %v3278_v33, %v3494_v56  ;;  %v3197_v56 = vld [vmem:[%s4012_s1 + $0x148] sm:$0xff]  }
 0x25c   : > { %v3205_v33 = vld [vmem:[%s4012_s1 + $0x188] sm:$0xff]  }
 0x25d   : > { %v664_v37 = vmul.f32 %v663_v32, %v658_v34  ;;  %v3206_v34 = vld [vmem:[%s4012_s1 + $0x1c0] sm:$0xff]  }
 0x25e   : > { %v3280_v38 = vpop.eup %3279 }
 0x25f   : > { %v659_v39 = vmul.f32 %v3280_v38, %v3492_v55  ;;  %v670_v40 = vadd.f32 %v669_v35, %v664_v37  ;;  %v3208_v37 = vld [vmem:[%s4012_s1 + $0x1c8] sm:$0xff]   ;;  %v3209_v38 = vld [vmem:[%s4012_s1 + $0x198] sm:$0xff]  }
 0x261   : > { %v665_v43 = vmul.f32 %v663_v32, %v659_v39  ;;  %v672_v45 = vmax.f32 %v670_v40, 0.0  ;;  %v3204_v32 = vld [vmem:[%s4012_s1 + $0x180] sm:$0xff]   ;;  %v3210_v39 = vld [vmem:[%s4012_s1 + $0x1d0] sm:$0xff]  }
 0x262   : > { %v3211_v40 = vld [vmem:[%s4012_s1 + $0x1a0] sm:$0xff]  }
 0x263   : > { %v671_v44 = vadd.f32 %v669_v35, %v665_v43  ;;  %v691_v47 = vsel %vm681_vm3, %v672_v45, 0.0  ;;  %v3207_v35 = vld [vmem:[%s4012_s1 + $0x190] sm:$0xff]   ;;  %v3214_v43 = vld [vmem:[%s4012_s1 + $0x1e0] sm:$0xff]  }
 0x265   : > { %v673_v46 = vmax.f32 %v671_v44, 0.0  ;;  %v3215_v44 = vld [vmem:[%s4012_s1 + $0x1b0] sm:$0xff]  }
 0x267   : > { %v692_v48 = vsel %vm684_vm2, %v673_v46, 0.0  ;;  %v2449_v49 = vpack.c.bf16 %v673_v46, %v672_v45  ;;  %v3216_v45 = vld [vmem:[%s4012_s1 + $0x1e8] sm:$0xff]   ;;  %v3217_v46 = vld [vmem:[%s4012_s1 + $0x1b8] sm:$0xff]  }
 0x268   : > { %v693_v50 = vpack.c.bf16 %v692_v48, %v691_v47  ;;  %v3218_v47 = vld [vmem:[%s4012_s1 + $0x1f0] sm:$0xff]   ;;  %v3219_v48 = vld [vmem:[%s4012_s1 + $0x1f8] sm:$0xff]  }
 0x269   : > { %2926 = vmatmul.mubr.msk.bf16.vlgmr.msra.gmra.mrb[8].mxu0 %vm2448_vm4, %v2449_v49 }
 0x26a   : > { %v731_v51 = vshll.u32 %v693_v50, 16  ;;  %2965 = vmatprep.mubr.msk.bf16.mxu0 %vm3320_vm0, %v3319_v1  ;;  %v729_v52 = vshrl.u32 %v693_v50, 16  ;;  %v932_v63 = vrot.slane %v693_v50, 1  ;;  %2950 = vmatpush3.bf16.msra.mxu0 %v3206_v34 }
 0x26b   : > { %2951 = vmatprep.subr.bf16.mxu0 %v3319_v1 }
 0x26c   : > { %v733_v53 = vrot.slane %v731_v51, 1 }
 0x26e   : > { %v734_v55 = vor.u32 %v733_v53, %v729_v52  ;;  %2952 = vmatpush3.bf16.msra.mxu0 %v3208_v37 }
 0x26f   : > { %2953 = vmatprep.subr.bf16.mxu0 %v3319_v1 }
 0x270   : > { %2906 = vmatmul.mubr.bf16.vlgmr.msra.gmra.mrb[4].mxu1 %v734_v55 }
 0x271   : > { %2930 = vmatpush3.bf16.msra.mxu1 %v3196_v54  ;;  %2945 = vmatprep.mubr.msk.bf16.mxu1 %vm3320_vm0, %v3319_v1 }
 0x272   : > { %2931 = vmatprep.subr.bf16.mxu1 %v3319_v1  ;;  %2954 = vmatpush3.bf16.msra.mxu0 %v3210_v39 }
 0x273   : > { %2955 = vmatprep.subr.bf16.mxu0 %v3319_v1 }
 0x275   : > { %2932 = vmatpush3.bf16.msra.mxu1 %v3197_v56 }
 0x276   : > { %2933 = vmatprep.subr.bf16.mxu1 %v3319_v1  ;;  %2956 = vmatpush3.bf16.msra.mxu0 %v3212_v41 }
 0x277   : > { %2957 = vmatprep.subr.bf16.mxu0 %v3319_v1 }
 0x279   : > { %2934 = vmatpush3.bf16.msra.mxu1 %v3198_v57 }
 0x27a   : > { %2935 = vmatprep.subr.bf16.mxu1 %v3319_v1  ;;  %2958 = vmatpush3.bf16.msra.mxu0 %v3214_v43  ;;  %v3222_v43 = vld [vmem:[%s4012_s1 + $0x210] sm:$0xff]  }
 0x27b   : > { %2959 = vmatprep.subr.bf16.mxu0 %v3319_v1 }
 0x27d   : > { %2936 = vmatpush3.bf16.msra.mxu1 %v3199_v58 }
 0x27e   : > { %2937 = vmatprep.subr.bf16.mxu1 %v3319_v1  ;;  %2960 = vmatpush3.bf16.msra.mxu0 %v3216_v45  ;;  %v3224_v45 = vld [vmem:[%s4012_s1 + $0x220] sm:$0xff]  }
 0x27f   : > { %2961 = vmatprep.subr.bf16.mxu0 %v3319_v1 }
 0x281   : > { %2938 = vmatpush3.bf16.msra.mxu1 %v3200_v59 }
 0x282   : > { %2939 = vmatprep.subr.bf16.mxu1 %v3319_v1  ;;  %2962 = vmatpush3.bf16.msra.mxu0 %v3218_v47  ;;  %v3226_v47 = vld [vmem:[%s4012_s1 + $0x230] sm:$0xff]  }
 0x283   : > { %2963 = vmatprep.subr.bf16.mxu0 %v3319_v1 }
 0x285   : > { %2940 = vmatpush3.bf16.msra.mxu1 %v3201_v60 }
 0x286   : > { %2941 = vmatprep.subr.bf16.mxu1 %v3319_v1  ;;  %2964 = vmatpush3.bf16.msra.mxu0 %v3219_v48  ;;  %v3227_v48 = vld [vmem:[%s4012_s1 + $0x238] sm:$0xff]  }
 0x287   : > { %2989 = vmatprep.subr.bf16.mxu0 %v3319_v1 }
 0x289   : > { %2942 = vmatpush3.bf16.msra.mxu1 %v3202_v61 }
 0x28a   : > { %2943 = vmatprep.subr.bf16.mxu1 %v3319_v1 }
 0x28d   : > { %2944 = vmatpush3.bf16.msra.mxu1 %v3203_v62 }
 0x28e   : > { %2969 = vmatprep.subr.bf16.mxu1 %v3319_v1 }
 0x290   : > { %2946 = vmatmul.mubr.bf16.vlgmr.msra.gmra.mrb[8].mxu1 %v932_v63  ;;  %v1070_v63 = vsub.s32 2, %v3565_v27 }
 0x291   : > { %2985 = vmatprep.mubr.msk.bf16.mxu1 %vm3320_vm0, %v3319_v1  ;;  %2970 = vmatpush3.bf16.msra.mxu1 %v3204_v32 }
 0x292   : > { %2971 = vmatprep.subr.bf16.mxu1 %v3319_v1 }
 0x295   : > { %2972 = vmatpush3.bf16.msra.mxu1 %v3205_v33 }
 0x296   : > { %2973 = vmatprep.subr.bf16.mxu1 %v3319_v1 }
 0x299   : > { %2974 = vmatpush3.bf16.msra.mxu1 %v3207_v35 }
 0x29a   : > { %2975 = vmatprep.subr.bf16.mxu1 %v3319_v1 }
 0x29d   : > { %2976 = vmatpush3.bf16.msra.mxu1 %v3209_v38 }
 0x29e   : > { %2977 = vmatprep.subr.bf16.mxu1 %v3319_v1 }
 0x2a1   : > { %2978 = vmatpush3.bf16.msra.mxu1 %v3211_v40  ;;  %v3220_v40 = vld [vmem:[%s4012_s1 + $0x200] sm:$0xff]  }
 0x2a2   : > { %2979 = vmatprep.subr.bf16.mxu1 %v3319_v1 }
 0x2a5   : > { %2980 = vmatpush3.bf16.msra.mxu1 %v3213_v42  ;;  %v3221_v42 = vld [vmem:[%s4012_s1 + $0x208] sm:$0xff]  }
 0x2a6   : > { %2981 = vmatprep.subr.bf16.mxu1 %v3319_v1 }
 0x2a9   : > { %2982 = vmatpush3.bf16.msra.mxu1 %v3215_v44  ;;  %v3223_v44 = vld [vmem:[%s4012_s1 + $0x218] sm:$0xff]  }
 0x2aa   : > { %2983 = vmatprep.subr.bf16.mxu1 %v3319_v1 }
 0x2ad   : > { %2984 = vmatpush3.bf16.msra.mxu1 %v3217_v46  ;;  %v3225_v46 = vld [vmem:[%s4012_s1 + $0x228] sm:$0xff]  }
 0x2ae   : > { %3009 = vmatprep.subr.bf16.mxu1 %v3319_v1 }
 0x33c   : > { %v907_v0 = vpop.f32.mrb[8].mxu0 }
 0x33d   : > { %v2927_v2 = vpop.f32.mrb[9].mxu0 }
 0x33e   : > { %v910_v3 = vpop.f32.mrb[10].mxu0  ;;  %v1071_v2 = vrot.slane %v3576_v30, %v1070_v63 }
 0x33f   : > { %v2928_v4 = vpop.f32.mrb[11].mxu0 }
 0x343   : > { %v818_v5 = vpop.f32.mrb[4].mxu1 }
 0x344   : > { %v908_v6 = vadd.f32 %v907_v0, %v818_v5  ;;  %v2907_v7 = vpop.f32.mrb[5].mxu1  ;;  %v1076_v0 = vsub.s32 3, %v3565_v27 }
 0x345   : > { %v821_v8 = vpop.f32.mrb[6].mxu1 }
 0x346   : > { %v911_v9 = vadd.f32 %v910_v3, %v821_v8  ;;  %v2908_v10 = vpop.f32.mrb[7].mxu1  ;;  %v1077_v5 = vrot.slane %v3576_v30, %v1076_v0 }
 0x363   : > { %v1016_v11 = vpop.f32.mrb[8].mxu1 }
 0x364   : > { %v1023_v13 = vadd.f32 %v1016_v11, %v908_v6  ;;  %v2947_v14 = vpop.f32.mrb[9].mxu1 }
 0x365   : > { %v1019_v15 = vpop.f32.mrb[10].mxu1 }
 0x366   : > { %v1024_v16 = vadd.f32 %v1019_v15, %v911_v9  ;;  %v2948_v17 = vpop.f32.mrb[11].mxu1  ;;  %v1033_v18 = vadd.f32 %v2476_v12, %v1023_v13  ;;  %v3293_v13 = vld [vmem:[%s3413_s16] sm:$0xff]  }
 0x367   : > { %v1082_v14 = vunpack.c.l.bf16 %v3293_v13  ;;  %v1083_v17 = vunpack.c.h.bf16 %v3293_v13 }
 0x368   : > { %1035 = vadd.xlane.f32.xlu1 %v1033_v18  ;;  %v1034_v19 = vadd.f32 %v2476_v12, %v1024_v16 }
 0x36a   : > { %v1038_v20 = vsel %vm1037_vm5, %v1034_v19, 0.0 }
 0x36b   : > { %1039 = vadd.xlane.f32.xlu0 %v1038_v20  ;;  %v1097_v20 = vadd.s32 4294967294, %v3583_v36 }
 0x36d   : > { %vm1101_vm8 = vcmp.lt.s32.totalorder %v1097_v20, 8  ;;  %v3232_v20 = vld [vmem:[%s4013_s2 + $0x48] sm:$0xff]  }
 0x3f5   : > { %v1036_v21 = vpop.xlane.xlu1 %1035 }
 0x3f6   : > { %v1041_v22 = vmul.f32 0.03125, %v1036_v21 }
 0x3f8   : > { %v3629_v23 = vsub.f32 %v1033_v18, %v1041_v22  ;;  %v1040_v24 = vpop.xlane.xlu0 %1039  ;;  %v1054_v49 = vmul.f32 %v1041_v22, %v1041_v22 }
 0x3f9   : > { %v1042_v25 = vmul.f32 0.03125, %v1040_v24 }
 0x3fa   : > { %v1045_v26 = vmul.f32 %v3629_v23, %v3629_v23  ;;  %v1056_v51 = vmul.f32 3.0, %v1054_v49 }
 0x3fb   : > { %v3633_v28 = vsub.f32 %v1034_v19, %v1042_v25  ;;  %v1055_v52 = vmul.f32 %v1042_v25, %v1042_v25  ;;  %v1096_v19 = vadd.s32 4294967294, %v3565_v27 }
 0x3fc   : > { %1047 = vadd.xlane.f32.xlu0 %v1045_v26 }
 0x3fd   : > { %v1046_v29 = vmul.f32 %v3633_v28, %v3633_v28  ;;  %v1057_v56 = vmul.f32 3.0, %v1055_v52  ;;  %vm1098_vm7 = vcmp.ge.s32.totalorder %v1096_v19, 0  ;;  %v3231_v19 = vld [vmem:[%s4013_s2 + $0x10] sm:$0xff]  }
 0x3fe   : > { %vm2525_vm9 = vmpackc.low %vm1101_vm8, %vm1098_vm7 }
 0x3ff   : > { %v1049_v31 = vsel %vm1037_vm5, %v1046_v29, 0.0 }
 0x400   : > { %1050 = vadd.xlane.f32.xlu1 %v1049_v31 }
 0x489   : > { %v1048_v50 = vpop.xlane.xlu0 %1047 }
 0x48a   : > { %v1052_v53 = vmul.f32 0.03125, %v1048_v50 }
 0x48c   : > { %v1058_v54 = vsub.f32 %v1052_v53, %v1056_v51 }
 0x48d   : > { %v1051_v55 = vpop.xlane.xlu1 %1050 }
 0x48e   : > { %v1060_v57 = vmax.f32 %v1058_v54, 0.0  ;;  %v1053_v58 = vmul.f32 0.03125, %v1051_v55 }
 0x490   : > { %v1062_v59 = vadd.f32 1e-05, %v1060_v57  ;;  %v1059_v60 = vsub.f32 %v1053_v58, %v1057_v56 }
 0x492   : > { %3281 = vrsqrt.f32 %v1062_v59  ;;  %v1061_v61 = vmax.f32 %v1059_v60, 0.0 }
 0x494   : > { %v1063_v62 = vadd.f32 1e-05, %v1061_v61  ;;  %v2553_v61 = vld [vmem:[%s4014_s3 + $0x2] ss:$0 sm:$0xff] }
 0x496   : > { %3283 = vrsqrt.f32 %v1063_v62 }
 0x49c   : > { %v3282_v3 = vpop.eup %3281 }
 0x49d   : > { %v1066_v4 = vmul.f32 %v3282_v3, %v3629_v23 }
 0x49f   : > { %v1072_v6 = vmul.f32 %v1071_v2, %v1066_v4 }
 0x4a0   : > { %v3284_v7 = vpop.eup %3283 }
 0x4a1   : > { %v1067_v8 = vmul.f32 %v3284_v7, %v3633_v28  ;;  %v1078_v9 = vadd.f32 %v1077_v5, %v1072_v6 }
 0x4a3   : > { %v1073_v10 = vmul.f32 %v1071_v2, %v1067_v8  ;;  %v1080_v11 = vmax.f32 %v1078_v9, 0.0 }
 0x4a5   : > { %v1079_v12 = vadd.f32 %v1077_v5, %v1073_v10  ;;  %v1087_v15 = vrot.slane %v1080_v11, 6 }
 0x4a7   : > { %v1081_v16 = vmax.f32 %v1079_v12, 0.0  ;;  %v1092_v21 = vadd.f32 %v1087_v15, %v1082_v14 }
 0x4a9   : > { %v1088_v18 = vrot.slane %v1081_v16, 6  ;;  %v1110_v24 = vrot.slane %v1092_v21, 2  ;;  %v3228_v16 = vld [vmem:[%s4013_s2] sm:$0xff]   ;;  %v3233_v21 = vld [vmem:[%s4013_s2 + $0x18] sm:$0xff]  }
 0x4ab   : > { %v1089_v22 = vsel %vm1086_vm6, %v1087_v15, %v1088_v18  ;;  %v3230_v18 = vld [vmem:[%s4013_s2 + $0x40] sm:$0xff]  }
 0x4ac   : > { %v1093_v23 = vadd.f32 %v1089_v22, %v1083_v17  ;;  %v3229_v17 = vld [vmem:[%s4013_s2 + $0x8] sm:$0xff]   ;;  %v3234_v22 = vld [vmem:[%s4013_s2 + $0x50] sm:$0xff]  }
 0x4ae   : > { %v1111_v25 = vrot.slane %v1093_v23, 2  ;;  %v3235_v23 = vld [vmem:[%s4013_s2 + $0x20] sm:$0xff]  }
 0x4b0   : > { %v1112_v26 = vsel %vm629_vm1, %v1110_v24, %v1111_v25  ;;  %v1116_v28 = vsel %vm1101_vm8, %v1111_v25, 0.0  ;;  %v3236_v24 = vld [vmem:[%s4013_s2 + $0x58] sm:$0xff]  }
 0x4b1   : > { %v1115_v29 = vsel %vm1098_vm7, %v1112_v26, 0.0  ;;  %v2526_v31 = vpack.c.bf16 %v1111_v25, %v1112_v26  ;;  %v1886_v32 = vrot.slane %v1116_v28, 2  ;;  %v3237_v25 = vld [vmem:[%s4013_s2 + $0x28] sm:$0xff]   ;;  %v3238_v26 = vld [vmem:[%s4013_s2 + $0x60] sm:$0xff]  }
 0x4b2   : > { %v1117_v33 = vpack.c.bf16 %v1116_v28, %v1115_v29  ;;  %v1885_v34 = vrot.slane %v1115_v29, 2  ;;  %v3239_v28 = vld [vmem:[%s4013_s2 + $0x30] sm:$0xff]   ;;  %v3240_v29 = vld [vmem:[%s4013_s2 + $0x68] sm:$0xff]  }
 0x4b3   : > { %2986 = vmatmul.mubr.msk.bf16.vlgmr.msra.gmra.mrb[12].mxu1 %vm2525_vm9, %v2526_v31  ;;  %v3241_v31 = vld [vmem:[%s4013_s2 + $0x38] sm:$0xff]  }
 0x4b4   : > { %v3713_v35 = vsel %vm629_vm1, %v1885_v34, %v1886_v32  ;;  %v1155_v37 = vshll.u32 %v1117_v33, 16  ;;  %3025 = vmatprep.mubr.msk.bf16.mxu1 %vm3320_vm0, %v3319_v1  ;;  %v1153_v38 = vshrl.u32 %v1117_v33, 16  ;;  %v1356_v49 = vrot.slane %v1117_v33, 1  ;;  %3010 = vmatpush3.bf16.msra.mxu1 %v3230_v18  ;;  %v3242_v32 = vld [vmem:[%s4013_s2 + $0x70] sm:$0xff]   ;;  %v3244_v33 = vld [vmem:[%s4013_s2 + $0x78] sm:$0xff]   ;;  %v3251_v18 = vld [vmem:[%s4013_s2 + $0x120] sm:$0xff]  }
 0x4b5   : > { %3011 = vmatprep.subr.bf16.mxu1 %v3319_v1 }
 0x4b6   : > { %v1157_v39 = vrot.slane %v1155_v37, 1 }
 0x4b8   : > { %v1158_v41 = vor.u32 %v1157_v39, %v1153_v38  ;;  %3012 = vmatpush3.bf16.msra.mxu1 %v3232_v20  ;;  %v3253_v20 = vld [vmem:[%s4013_s2 + $0x128] sm:$0xff]  }
 0x4b9   : > { %3013 = vmatprep.subr.bf16.mxu1 %v3319_v1 }
 0x4ba   : > { %2966 = vmatmul.mubr.bf16.vlgmr.msra.gmra.mrb[12].mxu0 %v1158_v41 }
 0x4bb   : > { %2990 = vmatpush3.bf16.msra.mxu0 %v3220_v40  ;;  %3005 = vmatprep.mubr.msk.bf16.mxu0 %vm3320_vm0, %v3319_v1 }
 0x4bc   : > { %2991 = vmatprep.subr.bf16.mxu0 %v3319_v1  ;;  %3014 = vmatpush3.bf16.msra.mxu1 %v3234_v22  ;;  %v3255_v22 = vld [vmem:[%s4013_s2 + $0x130] sm:$0xff]  }
 0x4bd   : > { %3015 = vmatprep.subr.bf16.mxu1 %v3319_v1 }
 0x4bf   : > { %2992 = vmatpush3.bf16.msra.mxu0 %v3221_v42 }
 0x4c0   : > { %2993 = vmatprep.subr.bf16.mxu0 %v3319_v1  ;;  %3016 = vmatpush3.bf16.msra.mxu1 %v3236_v24  ;;  %v3257_v24 = vld [vmem:[%s4013_s2 + $0x138] sm:$0xff]  }
 0x4c1   : > { %3017 = vmatprep.subr.bf16.mxu1 %v3319_v1 }
 0x4c3   : > { %2994 = vmatpush3.bf16.msra.mxu0 %v3222_v43 }
 0x4c4   : > { %2995 = vmatprep.subr.bf16.mxu0 %v3319_v1  ;;  %3018 = vmatpush3.bf16.msra.mxu1 %v3238_v26  ;;  %v3259_v26 = vld [vmem:[%s4013_s2 + $0x140] sm:$0xff]  }
 0x4c5   : > { %3019 = vmatprep.subr.bf16.mxu1 %v3319_v1 }
 0x4c7   : > { %2996 = vmatpush3.bf16.msra.mxu0 %v3223_v44 }
 0x4c8   : > { %2997 = vmatprep.subr.bf16.mxu0 %v3319_v1  ;;  %3020 = vmatpush3.bf16.msra.mxu1 %v3240_v29  ;;  %v3261_v29 = vld [vmem:[%s4013_s2 + $0x148] sm:$0xff]  }
 0x4c9   : > { %3021 = vmatprep.subr.bf16.mxu1 %v3319_v1 }
 0x4cb   : > { %2998 = vmatpush3.bf16.msra.mxu0 %v3224_v45 }
 0x4cc   : > { %2999 = vmatprep.subr.bf16.mxu0 %v3319_v1  ;;  %3022 = vmatpush3.bf16.msra.mxu1 %v3242_v32 }
 0x4cd   : > { %3023 = vmatprep.subr.bf16.mxu1 %v3319_v1 }
 0x4cf   : > { %3000 = vmatpush3.bf16.msra.mxu0 %v3225_v46 }
 0x4d0   : > { %3001 = vmatprep.subr.bf16.mxu0 %v3319_v1  ;;  %3024 = vmatpush3.bf16.msra.mxu1 %v3244_v33  ;;  %v3263_v33 = vld [vmem:[%s4013_s2 + $0x150] sm:$0xff]  }
 0x4d1   : > { %3049 = vmatprep.subr.bf16.mxu1 %v3319_v1 }
 0x4d3   : > { %3002 = vmatpush3.bf16.msra.mxu0 %v3226_v47 }
 0x4d4   : > { %3003 = vmatprep.subr.bf16.mxu0 %v3319_v1 }
 0x4d7   : > { %3004 = vmatpush3.bf16.msra.mxu0 %v3227_v48 }
 0x4d8   : > { %3029 = vmatprep.subr.bf16.mxu0 %v3319_v1 }
 0x4da   : > { %3006 = vmatmul.mubr.bf16.vlgmr.msra.gmra.mrb[16].mxu0 %v1356_v49 }
 0x4db   : > { %3045 = vmatprep.mubr.msk.bf16.mxu0 %vm3320_vm0, %v3319_v1  ;;  %3030 = vmatpush3.bf16.msra.mxu0 %v3228_v16  ;;  %v3249_v16 = vld [vmem:[%s4013_s2 + $0x118] sm:$0xff]  }
 0x4dc   : > { %3031 = vmatprep.subr.bf16.mxu0 %v3319_v1 }
 0x4df   : > { %3032 = vmatpush3.bf16.msra.mxu0 %v3229_v17  ;;  %v3250_v17 = vld [vmem:[%s4013_s2 + $0x90] sm:$0xff]  }
 0x4e0   : > { %3033 = vmatprep.subr.bf16.mxu0 %v3319_v1 }
 0x4e3   : > { %3034 = vmatpush3.bf16.msra.mxu0 %v3231_v19  ;;  %v3252_v19 = vld [vmem:[%s4013_s2 + $0x98] sm:$0xff]  }
 0x4e4   : > { %3035 = vmatprep.subr.bf16.mxu0 %v3319_v1 }
 0x4e7   : > { %3036 = vmatpush3.bf16.msra.mxu0 %v3233_v21  ;;  %v3254_v21 = vld [vmem:[%s4013_s2 + $0xa0] sm:$0xff]  }
 0x4e8   : > { %3037 = vmatprep.subr.bf16.mxu0 %v3319_v1 }
 0x4eb   : > { %3038 = vmatpush3.bf16.msra.mxu0 %v3235_v23  ;;  %v3256_v23 = vld [vmem:[%s4013_s2 + $0xa8] sm:$0xff]  }
 0x4ec   : > { %3039 = vmatprep.subr.bf16.mxu0 %v3319_v1 }
 0x4ef   : > { %3040 = vmatpush3.bf16.msra.mxu0 %v3237_v25  ;;  %v3258_v25 = vld [vmem:[%s4013_s2 + $0xb0] sm:$0xff]  }
 0x4f0   : > { %3041 = vmatprep.subr.bf16.mxu0 %v3319_v1 }
 0x4f3   : > { %3042 = vmatpush3.bf16.msra.mxu0 %v3239_v28  ;;  %v3260_v28 = vld [vmem:[%s4013_s2 + $0xb8] sm:$0xff]  }
 0x4f4   : > { %3043 = vmatprep.subr.bf16.mxu0 %v3319_v1 }
 0x4f7   : > { %3044 = vmatpush3.bf16.msra.mxu0 %v3241_v31  ;;  %v3262_v31 = vld [vmem:[%s4013_s2 + $0xc0] sm:$0xff]  }
 0x4f8   : > { %3069 = vmatprep.subr.bf16.mxu0 %v3319_v1 }
 0x586   : > { %v1331_v50 = vpop.f32.mrb[12].mxu1 }
 0x587   : > { %v2987_v51 = vpop.f32.mrb[13].mxu1 }
 0x588   : > { %v1334_v52 = vpop.f32.mrb[14].mxu1  ;;  %v1499_v51 = vsub.s32 5, %v3565_v27 }
 0x589   : > { %v2988_v53 = vpop.f32.mrb[15].mxu1 }
 0x58d   : > { %v1242_v54 = vpop.f32.mrb[12].mxu0 }
 0x58e   : > { %v1332_v55 = vadd.f32 %v1331_v50, %v1242_v54  ;;  %v2967_v56 = vpop.f32.mrb[13].mxu0  ;;  %v1493_v50 = vsub.s32 4, %v3565_v27 }
 0x58f   : > { %v1245_v57 = vpop.f32.mrb[14].mxu0 }
 0x590   : > { %v1335_v58 = vadd.f32 %v1334_v52, %v1245_v57  ;;  %v2968_v59 = vpop.f32.mrb[15].mxu0  ;;  %v1494_v52 = vrot.slane %v3576_v30, %v1493_v50 }
 0x5ad   : > { %v1440_v60 = vpop.f32.mrb[16].mxu0 }
 0x5ae   : > { %v1447_v62 = vadd.f32 %v1440_v60, %v1332_v55  ;;  %v3007_v63 = vpop.f32.mrb[17].mxu0  ;;  %v1500_v55 = vrot.slane %v3576_v30, %v1499_v51  ;;  %v1508_v60 = vadd.s32 4294967295, %v3583_v36 }
 0x5af   : > { %v1443_v0 = vpop.f32.mrb[18].mxu0 }
 0x5b0   : > { %v1448_v2 = vadd.f32 %v1443_v0, %v1335_v58  ;;  %v3008_v3 = vpop.f32.mrb[19].mxu0  ;;  %v1457_v4 = vadd.f32 %v2553_v61, %v1447_v62  ;;  %vm1512_vm10 = vcmp.lt.s32.totalorder %v1508_v60, 8 }
 0x5b2   : > { %1459 = vadd.xlane.f32.xlu1 %v1457_v4  ;;  %v1458_v5 = vadd.f32 %v2553_v61, %v1448_v2  ;;  %v1507_v61 = vadd.s32 4294967295, %v3565_v27 }
 0x5b4   : > { %v1461_v6 = vsel %vm1086_vm6, %v1458_v5, 0.0  ;;  %vm1509_vm11 = vcmp.ge.s32.totalorder %v1507_v61, 0 }
 0x5b5   : > { %1462 = vadd.xlane.f32.xlu0 %v1461_v6  ;;  %vm3838_vm12 = vmpackc.low %vm1512_vm10, %vm1509_vm11 }
 0x63f   : > { %v1460_v7 = vpop.xlane.xlu1 %1459 }
 0x640   : > { %v1464_v8 = vmul.f32 0.03125, %v1460_v7 }
 0x642   : > { %v3757_v9 = vsub.f32 %v1457_v4, %v1464_v8  ;;  %v1463_v10 = vpop.xlane.xlu0 %1462  ;;  %v1477_v34 = vmul.f32 %v1464_v8, %v1464_v8  ;;  %v3243_v4 = vld [vmem:[%s4013_s2 + $0x100] sm:$0xff]   ;;  %v3245_v8 = vld [vmem:[%s4013_s2 + $0x108] sm:$0xff]  }
 0x643   : > { %v1465_v11 = vmul.f32 0.03125, %v1463_v10 }
 0x644   : > { %v1468_v12 = vmul.f32 %v3757_v9, %v3757_v9  ;;  %v1479_v38 = vmul.f32 3.0, %v1477_v34  ;;  %v3264_v34 = vld [vmem:[%s4013_s2 + $0xc8] sm:$0xff]  }
 0x645   : > { %v3761_v13 = vsub.f32 %v1458_v5, %v1465_v11  ;;  %v1478_v39 = vmul.f32 %v1465_v11, %v1465_v11 }
 0x646   : > { %1470 = vadd.xlane.f32.xlu0 %v1468_v12  ;;  %v3246_v12 = vld [vmem:[%s4013_s2 + $0x80] sm:$0xff]  }
 0x647   : > { %v1469_v14 = vmul.f32 %v3761_v13, %v3761_v13  ;;  %v1480_v43 = vmul.f32 3.0, %v1478_v39  ;;  %v3267_v39 = vld [vmem:[%s4013_s2 + $0x160] sm:$0xff]  }
 0x649   : > { %v1472_v15 = vsel %vm1086_vm6, %v1469_v14, 0.0  ;;  %v3247_v14 = vld [vmem:[%s4013_s2 + $0x110] sm:$0xff]  }
 0x64a   : > { %1473 = vadd.xlane.f32.xlu1 %v1472_v15  ;;  %v3248_v15 = vld [vmem:[%s4013_s2 + $0x88] sm:$0xff]  }
 0x6d3   : > { %v1471_v37 = vpop.xlane.xlu0 %1470 }
 0x6d4   : > { %v1475_v40 = vmul.f32 0.03125, %v1471_v37  ;;  %v3265_v37 = vld [vmem:[%s4013_s2 + $0x158] sm:$0xff]  }
 0x6d6   : > { %v1481_v41 = vsub.f32 %v1475_v40, %v1479_v38  ;;  %v3266_v38 = vld [vmem:[%s4013_s2 + $0xd0] sm:$0xff]   ;;  %v3268_v40 = vld [vmem:[%s4013_s2 + $0xd8] sm:$0xff]  }
 0x6d7   : > { %v1474_v42 = vpop.xlane.xlu1 %1473 }
 0x6d8   : > { %v1483_v44 = vmax.f32 %v1481_v41, 0.0  ;;  %v1476_v45 = vmul.f32 0.03125, %v1474_v42  ;;  %v3269_v41 = vld [vmem:[%s4013_s2 + $0x168] sm:$0xff]   ;;  %v3270_v42 = vld [vmem:[%s4013_s2 + $0xe0] sm:$0xff]  }
 0x6da   : > { %v1485_v46 = vadd.f32 1e-05, %v1483_v44  ;;  %v1482_v47 = vsub.f32 %v1476_v45, %v1480_v43  ;;  %v3271_v43 = vld [vmem:[%s4013_s2 + $0x170] sm:$0xff]   ;;  %v3272_v44 = vld [vmem:[%s4013_s2 + $0xe8] sm:$0xff]   ;;  %v3273_v45 = vld [vmem:[%s4013_s2 + $0x178] sm:$0xff]  }
 0x6dc   : > { %3285 = vrsqrt.f32 %v1485_v46  ;;  %v1484_v48 = vmax.f32 %v1482_v47, 0.0  ;;  %v3274_v46 = vld [vmem:[%s4013_s2 + $0xf0] sm:$0xff]   ;;  %v3275_v47 = vld [vmem:[%s4013_s2 + $0xf8] sm:$0xff]  }
 0x6de   : > { %v1486_v49 = vadd.f32 1e-05, %v1484_v48 }
 0x6e0   : > { %3287 = vrsqrt.f32 %v1486_v49 }
 0x6e6   : > { %v3286_v53 = vpop.eup %3285 }
 0x6e7   : > { %v1489_v54 = vmul.f32 %v3286_v53, %v3757_v9 }
 0x6e9   : > { %v1495_v56 = vmul.f32 %v1494_v52, %v1489_v54 }
 0x6ea   : > { %v3288_v57 = vpop.eup %3287 }
 0x6eb   : > { %v1490_v58 = vmul.f32 %v3288_v57, %v3761_v13  ;;  %v1501_v59 = vadd.f32 %v1500_v55, %v1495_v56 }
 0x6ed   : > { %v1496_v62 = vmul.f32 %v1494_v52, %v1490_v58  ;;  %v1503_v0 = vmax.f32 %v1501_v59, 0.0 }
 0x6ef   : > { %v1502_v63 = vadd.f32 %v1500_v55, %v1496_v62  ;;  %v1519_v5 = vsel %vm1509_vm11, %v1503_v0, 0.0 }
 0x6f1   : > { %v1504_v2 = vmax.f32 %v1502_v63, 0.0 }
 0x6f3   : > { %v1520_v6 = vsel %vm1512_vm10, %v1504_v2, 0.0  ;;  %v3845_v7 = vpack.c.bf16 %v1504_v2, %v1503_v0 }
 0x6f4   : > { %v3847_v36 = vpack.c.bf16 %v1520_v6, %v1519_v5 }
 0x6f5   : > { %3046 = vmatmul.mubr.msk.bf16.vlgmr.msra.gmra.mrb[20].mxu0 %vm3838_vm12, %v3845_v7 }
 0x6f6   : > { %3070 = vmatpush3.bf16.msra.mxu0 %v3243_v4  ;;  %v1558_v9 = vshll.u32 %v3847_v36, 16  ;;  %3085 = vmatprep.mubr.msk.bf16.mxu0 %vm3320_vm0, %v3319_v1  ;;  %v1556_v10 = vshrl.u32 %v3847_v36, 16  ;;  %v1757_v32 = vrot.slane %v3847_v36, 1 }
 0x6f7   : > { %3071 = vmatprep.subr.bf16.mxu0 %v3319_v1 }
 0x6f8   : > { %v1560_v11 = vrot.slane %v1558_v9, 1 }
 0x6fa   : > { %3072 = vmatpush3.bf16.msra.mxu0 %v3245_v8  ;;  %v1561_v13 = vor.u32 %v1560_v11, %v1556_v10 }
 0x6fb   : > { %3073 = vmatprep.subr.bf16.mxu0 %v3319_v1 }
 0x6fc   : > { %3026 = vmatmul.mubr.bf16.vlgmr.msra.gmra.mrb[16].mxu1 %v1561_v13 }
 0x6fd   : > { %3050 = vmatpush3.bf16.msra.mxu1 %v3246_v12  ;;  %3065 = vmatprep.mubr.msk.bf16.mxu1 %vm3320_vm0, %v3319_v1 }
 0x6fe   : > { %3074 = vmatpush3.bf16.msra.mxu0 %v3247_v14  ;;  %3051 = vmatprep.subr.bf16.mxu1 %v3319_v1 }
 0x6ff   : > { %3075 = vmatprep.subr.bf16.mxu0 %v3319_v1 }
 0x701   : > { %3052 = vmatpush3.bf16.msra.mxu1 %v3248_v15 }
 0x702   : > { %3076 = vmatpush3.bf16.msra.mxu0 %v3249_v16  ;;  %3053 = vmatprep.subr.bf16.mxu1 %v3319_v1 }
 0x703   : > { %3077 = vmatprep.subr.bf16.mxu0 %v3319_v1 }
 0x705   : > { %3054 = vmatpush3.bf16.msra.mxu1 %v3250_v17 }
 0x706   : > { %3078 = vmatpush3.bf16.msra.mxu0 %v3251_v18  ;;  %3055 = vmatprep.subr.bf16.mxu1 %v3319_v1 }
 0x707   : > { %3079 = vmatprep.subr.bf16.mxu0 %v3319_v1 }
 0x709   : > { %3056 = vmatpush3.bf16.msra.mxu1 %v3252_v19 }
 0x70a   : > { %3080 = vmatpush3.bf16.msra.mxu0 %v3253_v20  ;;  %3057 = vmatprep.subr.bf16.mxu1 %v3319_v1 }
 0x70b   : > { %3081 = vmatprep.subr.bf16.mxu0 %v3319_v1 }
 0x70d   : > { %3058 = vmatpush3.bf16.msra.mxu1 %v3254_v21 }
 0x70e   : > { %3082 = vmatpush3.bf16.msra.mxu0 %v3255_v22  ;;  %3059 = vmatprep.subr.bf16.mxu1 %v3319_v1 }
 0x70f   : > { %3083 = vmatprep.subr.bf16.mxu0 %v3319_v1 }
 0x711   : > { %3060 = vmatpush3.bf16.msra.mxu1 %v3256_v23 }
 0x712   : > { %3084 = vmatpush3.bf16.msra.mxu0 %v3257_v24  ;;  %3061 = vmatprep.subr.bf16.mxu1 %v3319_v1 }
 0x713   : > { %3109 = vmatprep.subr.bf16.mxu0 %v3319_v1 }
 0x715   : > { %3062 = vmatpush3.bf16.msra.mxu1 %v3258_v25  ;;  %3086 = vmatmul.mubr.bf16.vlgmr.msra.gmra.mrb[24].mxu0 %v1561_v13 }
 0x716   : > { %3110 = vmatpush3.bf16.msra.mxu0 %v3259_v26  ;;  %3063 = vmatprep.subr.bf16.mxu1 %v3319_v1 }
 0x717   : > { %3111 = vmatprep.subr.bf16.mxu0 %v3319_v1  ;;  %3125 = vmatprep.mubr.msk.bf16.mxu0 %vm3320_vm0, %v3319_v1 }
 0x719   : > { %3064 = vmatpush3.bf16.msra.mxu1 %v3260_v28 }
 0x71a   : > { %3112 = vmatpush3.bf16.msra.mxu0 %v3261_v29  ;;  %3089 = vmatprep.subr.bf16.mxu1 %v3319_v1 }
 0x71b   : > { %3113 = vmatprep.subr.bf16.mxu0 %v3319_v1 }
 0x71c   : > { %3066 = vmatmul.mubr.bf16.vlgmr.msra.gmra.mrb[20].mxu1 %v1757_v32 }
 0x71d   : > { %3090 = vmatpush3.bf16.msra.mxu1 %v3262_v31  ;;  %3105 = vmatprep.mubr.msk.bf16.mxu1 %vm3320_vm0, %v3319_v1  ;;  %v1874_v31 = vsub.s32 6, %v3565_v27 }
 0x71e   : > { %3114 = vmatpush3.bf16.msra.mxu0 %v3263_v33  ;;  %3091 = vmatprep.subr.bf16.mxu1 %v3319_v1 }
 0x71f   : > { %3115 = vmatprep.subr.bf16.mxu0 %v3319_v1  ;;  %v1875_v33 = vrot.slane %v3576_v30, %v1874_v31 }
 0x721   : > { %3092 = vmatpush3.bf16.msra.mxu1 %v3264_v34 }
 0x722   : > { %3116 = vmatpush3.bf16.msra.mxu0 %v3265_v37  ;;  %3093 = vmatprep.subr.bf16.mxu1 %v3319_v1  ;;  %v3294_v37 = vld [vmem:[%s3572_s7] sm:$0xff] }
 0x723   : > { %3117 = vmatprep.subr.bf16.mxu0 %v3319_v1 }
 0x725   : > { %3094 = vmatpush3.bf16.msra.mxu1 %v3266_v38 }
 0x726   : > { %3118 = vmatpush3.bf16.msra.mxu0 %v3267_v39  ;;  %3095 = vmatprep.subr.bf16.mxu1 %v3319_v1 }
 0x727   : > { %3119 = vmatprep.subr.bf16.mxu0 %v3319_v1 }
 0x729   : > { %3096 = vmatpush3.bf16.msra.mxu1 %v3268_v40 }
 0x72a   : > { %3120 = vmatpush3.bf16.msra.mxu0 %v3269_v41  ;;  %3097 = vmatprep.subr.bf16.mxu1 %v3319_v1 }
 0x72b   : > { %3121 = vmatprep.subr.bf16.mxu0 %v3319_v1 }
 0x72d   : > { %3098 = vmatpush3.bf16.msra.mxu1 %v3270_v42 }
 0x72e   : > { %3122 = vmatpush3.bf16.msra.mxu0 %v3271_v43  ;;  %3099 = vmatprep.subr.bf16.mxu1 %v3319_v1 }
 0x72f   : > { %3123 = vmatprep.subr.bf16.mxu0 %v3319_v1 }
 0x731   : > { %3100 = vmatpush3.bf16.msra.mxu1 %v3272_v44 }
 0x732   : > { %3124 = vmatpush3.bf16.msra.mxu0 %v3273_v45  ;;  %3101 = vmatprep.subr.bf16.mxu1 %v3319_v1 }
 0x735   : > { %3102 = vmatpush3.bf16.msra.mxu1 %v3274_v46  ;;  %3126 = vmatmul.mubr.bf16.vlgmr.msra.gmra.mrb[28].mxu0 %v1757_v32  ;;  %v1879_v32 = vsub.s32 7, %v3565_v27 }
 0x736   : > { %3103 = vmatprep.subr.bf16.mxu1 %v3319_v1  ;;  %v2614_v1 = vld [vmem:[%s4014_s3 + $0x3] ss:$0 sm:$0xff] }
 0x737   : > { %v1880_v38 = vrot.slane %v3294_v37, %v1879_v32 }
 0x739   : > { %3104 = vmatpush3.bf16.msra.mxu1 %v3275_v47 }
 0x73c   : > { %3106 = vmatmul.mubr.msk.bf16.vlgmr.msra.gmra.mrb[24].mxu1 %vm3838_vm12, %v3845_v7 }
 0x7c8   : > { %v1733_v48 = vpop.f32.mrb[20].mxu0 }
 0x7c9   : > { %v3047_v49 = vpop.f32.mrb[21].mxu0 }
 0x7ca   : > { %v1736_v50 = vpop.f32.mrb[22].mxu0 }
 0x7cb   : > { %v3048_v51 = vpop.f32.mrb[23].mxu0 }
 0x7cf   : > { %v1645_v52 = vpop.f32.mrb[16].mxu1 }
 0x7d0   : > { %v1734_v53 = vadd.f32 %v1733_v48, %v1645_v52  ;;  %v3027_v54 = vpop.f32.mrb[17].mxu1 }
 0x7d1   : > { %v1648_v55 = vpop.f32.mrb[18].mxu1 }
 0x7d2   : > { %v3028_v56 = vpop.f32.mrb[19].mxu1 }
 0x7e8   : > { %v2006_v57 = vpop.f32.mrb[24].mxu0 }
 0x7e9   : > { %v3087_v58 = vpop.f32.mrb[25].mxu0 }
 0x7ea   : > { %v2009_v59 = vpop.f32.mrb[26].mxu0 }
 0x7eb   : > { %v3088_v60 = vpop.f32.mrb[27].mxu0 }
 0x7ef   : > { %v1841_v61 = vpop.f32.mrb[20].mxu1 }
 0x7f0   : > { %v1847_v62 = vadd.f32 %v1841_v61, %v1734_v53  ;;  %v3067_v63 = vpop.f32.mrb[21].mxu1 }
 0x7f1   : > { %v1844_v0 = vpop.f32.mrb[22].mxu1 }
 0x7f2   : > { %v3068_v2 = vpop.f32.mrb[23].mxu1  ;;  %v1856_v3 = vadd.f32 %v2614_v1, %v1847_v62 }
 0x7f4   : > { %1857 = vadd.xlane.f32.xlu0 %v1856_v3 }
 0x808   : > { %v2199_v4 = vpop.f32.mrb[28].mxu0 }
 0x809   : > { %v3127_v5 = vpop.f32.mrb[29].mxu0 }
 0x80a   : > { %v2202_v6 = vpop.f32.mrb[30].mxu0 }
 0x80b   : > { %v3128_v7 = vpop.f32.mrb[31].mxu0 }
 0x80f   : > { %v2094_v36 = vpop.f32.mrb[24].mxu1 }
 0x810   : > { %v2095_v8 = vadd.f32 %v2094_v36, %v2006_v57  ;;  %v3107_v9 = vpop.f32.mrb[25].mxu1 }
 0x811   : > { %v2097_v10 = vpop.f32.mrb[26].mxu1 }
 0x812   : > { %v2205_v11 = vadd.f32 %v2199_v4, %v2095_v8  ;;  %v3108_v12 = vpop.f32.mrb[27].mxu1 }
 0x814   : > { %v2206_v13 = vadd.f32 %v2614_v1, %v2205_v11 }
 0x816   : > { %2207 = vadd.xlane.f32.xlu1 %v2206_v13 }
 0x881   : > { %v1858_v14 = vpop.xlane.xlu0 %1857 }
 0x882   : > { %v1859_v15 = vmul.f32 0.03125, %v1858_v14 }
 0x884   : > { %v1860_v16 = vsub.f32 %v1856_v3, %v1859_v15  ;;  %v1865_v22 = vmul.f32 %v1859_v15, %v1859_v15 }
 0x886   : > { %v1861_v17 = vmul.f32 %v1860_v16, %v1860_v16  ;;  %v1866_v24 = vmul.f32 3.0, %v1865_v22 }
 0x888   : > { %1862 = vadd.xlane.f32.xlu0 %v1861_v17 }
 0x8a3   : > { %v2208_v18 = vpop.xlane.xlu1 %2207 }
 0x8a4   : > { %v2209_v19 = vmul.f32 0.03125, %v2208_v18 }
 0x8a6   : > { %v2210_v20 = vsub.f32 %v2206_v13, %v2209_v19  ;;  %v2215_v44 = vmul.f32 %v2209_v19, %v2209_v19 }
 0x8a8   : > { %v2211_v21 = vmul.f32 %v2210_v20, %v2210_v20  ;;  %v2216_v27 = vmul.f32 3.0, %v2215_v44 }
 0x8aa   : > { %2212 = vadd.xlane.f32.xlu1 %v2211_v21 }
 0x915   : > { %v1863_v23 = vpop.xlane.xlu0 %1862 }
 0x916   : > { %v1864_v25 = vmul.f32 0.03125, %v1863_v23 }
 0x918   : > { %v1867_v26 = vsub.f32 %v1864_v25, %v1866_v24 }
 0x91a   : > { %v1868_v28 = vmax.f32 %v1867_v26, 0.0 }
 0x91c   : > { %v1869_v29 = vadd.f32 1e-05, %v1868_v28 }
 0x91e   : > { %3289 = vrsqrt.f32 %v1869_v29 }
 0x928   : > { %v3290_v34 = vpop.eup %3289 }
 0x929   : > { %v1871_v39 = vmul.f32 %v3290_v34, %v1860_v16 }
 0x92b   : > { %v1876_v40 = vmul.f32 %v1875_v33, %v1871_v39 }
 0x92d   : > { %v1881_v41 = vadd.f32 %v1880_v38, %v1876_v40 }
 0x92f   : > { %v1882_v42 = vmax.f32 %v1881_v41, 0.0 }
 0x931   : > { %v1889_v43 = vadd.f32 %v3713_v35, %v1882_v42 }
 0x933   : > { %2226 = vst [vmem:[%s277_s24] sm:$0xff] %v1889_v43 }
 0x937   : > { %v2213_v45 = vpop.xlane.xlu1 %2212 }
 0x938   : > { %v2214_v46 = vmul.f32 0.03125, %v2213_v45 }
 0x93a   : > { %v2217_v30 = vsub.f32 %v2214_v46, %v2216_v27 }
 0x93c   : > { %v2218_v47 = vmax.f32 %v2217_v30, 0.0 }
 0x93e   : > { %v2219_v48 = vadd.f32 1e-05, %v2218_v47 }
 0x940   : > { %3291 = vrsqrt.f32 %v2219_v48 }
 0x94a   : > { %v3292_v49 = vpop.eup %3291 }
 0x94b   : > { %v2221_v50 = vmul.f32 %v3292_v49, %v2210_v20 }
 0x94d   : > { %v2222_v51 = vmul.f32 %v2221_v50, %v1875_v33 }
 0x94f   : > { %v2223_v52 = vadd.f32 %v2222_v51, %v1880_v38 }
 0x951   : > { %v2224_v53 = vmax.f32 %v2223_v52, 0.0 }
 0x953   : > { %v2225_v54 = vadd.f32 %v2224_v53, %v3713_v35 }
 0x955   : > { %2227 = vst [vmem:[%s277_s24 + $0x8] sm:$0xff] %v2225_v54 }
 0x956 PF: > { %s15_s20 = sadd.s32 1, %s3317_s20   ;;  %s4019_s18 = smov %s3313_s19 }
 0x957   : > { %p12_p5 = scmp.ge.s32.totalorder %s15_s20, 4   ;;  %s4020_s19 = smov %s4022_s21 }
 0x959   :  { %14 = sbr.rel (!%p12_p5) target bundleno = 2 (0x2), region = 89 }

</bundles_post_ra>
